<compile_context>
chip_gen: v6e
topology: v6e:2x2x1
jax: 0.10.0
libtpu: 0.0.40
codegen_flags: <defaults>
</compile_context>

<pallas_src>
import jax
import jax.numpy as jnp
from jax.experimental import pallas as pl
from jax.experimental.pallas import tpu as pltpu


# ----------------------------------------------------------------------------
# Pallas kernel: fused loss partial sums for one stacked (ref, batch) slice
# ----------------------------------------------------------------------------
def _loss_kernel(warped_ref, tgt_ref, mask_ref, depth_ref, out_ref):
    warped = warped_ref[...].astype(jnp.float32)   # (C, H, W)
    tgt = tgt_ref[...].astype(jnp.float32)         # (C, H, W)
    mask = mask_ref[...].astype(jnp.float32)       # (1, H, W)
    depth = depth_ref[...].astype(jnp.float32)     # (1, H, W)

    def smooth_l1_sum(a, b):
        d = a - b
        ad = jnp.abs(d)
        return jnp.sum(jnp.where(ad < 1.0, 0.5 * d * d, ad - 0.5))

    # ---------------- reconstruction (smooth-L1 photo + gradient) -----------
    wm = warped * mask
    tm = tgt * mask
    photo_s = smooth_l1_sum(wm, tm)
    gx_s = smooth_l1_sum(wm[:, :, 1:] - wm[:, :, :-1],
                         tm[:, :, 1:] - tm[:, :, :-1])
    gy_s = smooth_l1_sum(wm[:, 1:, :] - wm[:, :-1, :],
                         tm[:, 1:, :] - tm[:, :-1, :])

    # ---------------- SSIM (x = tgt, y = warped), separable 3x3 pooling -----
    def row3(z):                        # 1x3 sums along W (valid)
        w = z.shape[-1]
        return z[..., 0:w - 2] + z[..., 1:w - 1] + z[..., 2:w]

    def col3(z):                        # 3x1 sums along H (valid)
        h = z.shape[-2]
        return z[..., 0:h - 2, :] + z[..., 1:h - 1, :] + z[..., 2:h, :]

    def pool3(z):                       # valid 3x3 mean, stride 1
        return col3(row3(z)) * (1.0 / 9.0)

    x, y = tgt, warped
    mu_x = pool3(x)
    mu_y = pool3(y)
    sigma_x = pool3(x * x) - mu_x * mu_x
    sigma_y = pool3(y * y) - mu_y * mu_y
    sigma_xy = pool3(x * y) - mu_x * mu_y
    C1 = 0.01 ** 2
    C2 = 0.03 ** 2
    ssim_n = (2.0 * mu_x * mu_y + C1) * (2.0 * sigma_xy + C2)
    ssim_d = (mu_x * mu_x + mu_y * mu_y + C1) * (sigma_x + sigma_y + C2)
    ssim_mask = pool3(mask)
    ssim_map = ssim_mask * jnp.clip(
        (1.0 - ssim_n * pl.reciprocal(ssim_d, approx=True)) * 0.5, 0.0, 1.0)
    ssim_s = jnp.sum(ssim_map)

    # ---------------- image-aware depth smoothness (lambda_wt = 1) ----------
    d_dx = depth[:, :, :-1] - depth[:, :, 1:]
    d_dy = depth[:, :-1, :] - depth[:, 1:, :]
    i_dx = tgt[:, :, :-1] - tgt[:, :, 1:]
    i_dy = tgt[:, :-1, :] - tgt[:, 1:, :]
    # NOTE: the reference reduces over dim=3 (width) for BOTH weights.
    weights_x = jnp.exp(-jnp.mean(jnp.abs(i_dx), axis=-1, keepdims=True))
    weights_y = jnp.exp(-jnp.mean(jnp.abs(i_dy), axis=-1, keepdims=True))
    smx_s = jnp.sum(jnp.abs(d_dx * weights_x))   # broadcasts to (C, H, W-1)
    smy_s = jnp.sum(jnp.abs(d_dy * weights_y))   # broadcasts to (C, H-1, W)

    # ---------------- write six partial sums into one lane-aligned tile -----
    sub = jax.lax.broadcasted_iota(jnp.int32, (8, 128), 0)
    lane = jax.lax.broadcasted_iota(jnp.int32, (8, 128), 1)

    def place(val, idx):
        return jnp.where((sub == 0) & (lane == idx), val, 0.0)

    out_ref[...] = (place(photo_s, 0) + place(gx_s, 1) + place(gy_s, 2)
                    + place(ssim_s, 3) + place(smx_s, 4) + place(smy_s, 5))


def pallas_pair_losses(warped_all, tgt_all, mask_all, depth_all, batch_per_pair):
    """warped/tgt: (G, C, H, W); mask/depth: (G, 1, H, W); G = n_refs * B."""
    G, C, H, W = warped_all.shape

    partials = pl.pallas_call(
        _loss_kernel,
        out_shape=jax.ShapeDtypeStruct((G, 8, 128), jnp.float32),
        grid=(G,),
        in_specs=[
            pl.BlockSpec((None, C, H, W), lambda g: (g, 0, 0, 0)),
            pl.BlockSpec((None, C, H, W), lambda g: (g, 0, 0, 0)),
            pl.BlockSpec((None, 1, H, W), lambda g: (g, 0, 0, 0)),
            pl.BlockSpec((None, 1, H, W), lambda g: (g, 0, 0, 0)),
        ],
        out_specs=pl.BlockSpec((None, 8, 128), lambda g: (g, 0, 0)),
        compiler_params=pltpu.CompilerParams(
            dimension_semantics=("parallel",),
            vmem_limit_bytes=48 * 1024 * 1024),
    )(warped_all, tgt_all, mask_all, depth_all)

    sums = jnp.sum(partials[:, 0, :6], axis=0)     # (6,) partial-sum reduce

    # Per-pair element counts (reference reduces each pair with 'mean').
    B = batch_per_pair
    n_photo = B * C * H * W
    n_gx = B * C * H * (W - 1)
    n_gy = B * C * (H - 1) * W
    n_ssim = B * C * (H - 2) * (W - 2)
    n_smx = B * C * H * (W - 1)
    n_smy = B * C * (H - 1) * W

    photo = sums[0] / n_photo
    gx = sums[1] / n_gx
    gy = sums[2] / n_gy
    ssim = sums[3] / n_ssim
    smx = sums[4] / n_smx
    smy = sums[5] / n_smy

    alpha = 0.5
    ploss = (1.0 - alpha) * photo + alpha * (gx + gy)
    sloss = ssim
    smloss = smx + smy
    return ploss, sloss, smloss


# ----------------------------------------------------------------------------
# Glue (plain JAX): inverse warp, pose -> matrix, bilinear sampling, resize
# ----------------------------------------------------------------------------
def euler2mat(angle):
    B = angle.shape[0]
    x, y, z = angle[:, 0], angle[:, 1], angle[:, 2]
    zeros = jnp.zeros_like(z)
    ones = jnp.ones_like(z)
    cz, sz = jnp.cos(z), jnp.sin(z)
    cy, sy = jnp.cos(y), jnp.sin(y)
    cx, sx = jnp.cos(x), jnp.sin(x)
    zmat = jnp.stack([cz, -sz, zeros, sz, cz, zeros, zeros, zeros, ones],
                     axis=1).reshape(B, 3, 3)
    ymat = jnp.stack([cy, zeros, sy, zeros, ones, zeros, -sy, zeros, cy],
                     axis=1).reshape(B, 3, 3)
    xmat = jnp.stack([ones, zeros, zeros, zeros, cx, -sx, zeros, sx, cx],
                     axis=1).reshape(B, 3, 3)
    return xmat @ ymat @ zmat


def pose_vec2mat(vec):
    # vec: (B, 6) = [tx, ty, tz, rx, ry, rz]
    trans = vec[:, :3, None]                 # (B,3,1)
    rot = euler2mat(vec[:, 3:])              # (B,3,3)
    return jnp.concatenate([rot, trans], axis=2)  # (B,3,4)


def bilinear_sample(img, grid):
    # img: (B,C,H,W), grid: (B,H,W,2) normalized to [-1,1], zero padding.
    B, C, H, W = img.shape
    x = (grid[..., 0] + 1.0) * 0.5 * (W - 1)
    y = (grid[..., 1] + 1.0) * 0.5 * (H - 1)
    x0 = jnp.floor(x)
    y0 = jnp.floor(y)
    x1 = x0 + 1.0
    y1 = y0 + 1.0
    wx1 = x - x0
    wx0 = 1.0 - wx1
    wy1 = y - y0
    wy0 = 1.0 - wy1

    flat = img.reshape(B, C, H * W)

    def gather(yy, xx):
        valid = ((xx >= 0) & (xx <= W - 1) & (yy >= 0) & (yy <= H - 1))
        xi = jnp.clip(xx, 0, W - 1).astype(jnp.int32)
        yi = jnp.clip(yy, 0, H - 1).astype(jnp.int32)
        idx = (yi * W + xi).reshape(B, 1, H * W)
        g = jnp.take_along_axis(flat, jnp.broadcast_to(idx, (B, C, H * W)),
                                axis=2).reshape(B, C, H, W)
        return g * valid[:, None, :, :].astype(img.dtype)

    out = (gather(y0, x0) * (wy0 * wx0)[:, None]
           + gather(y0, x1) * (wy0 * wx1)[:, None]
           + gather(y1, x0) * (wy1 * wx0)[:, None]
           + gather(y1, x1) * (wy1 * wx1)[:, None])
    return out


def inverse_warp(img, depth, pose, intrinsics):
    # img: (B,C,H,W), depth: (B,1,H,W), pose: (B,6), intrinsics: (B,3,3)
    B, C, H, W = img.shape
    d = depth[:, 0]  # (B,H,W)

    ii = jnp.broadcast_to(jnp.arange(H, dtype=jnp.float32)[:, None], (H, W))
    jj = jnp.broadcast_to(jnp.arange(W, dtype=jnp.float32)[None, :], (H, W))
    pix = jnp.stack([jj, ii, jnp.ones((H, W), jnp.float32)], axis=0)  # (3,H,W)
    pix_flat = pix.reshape(3, H * W)

    intr_inv = jnp.linalg.inv(intrinsics)                         # (B,3,3)
    cam = jnp.einsum('bij,jn->bin', intr_inv, pix_flat)           # (B,3,HW)
    cam = cam * d.reshape(B, 1, H * W)

    pose_mat = pose_vec2mat(pose)                                 # (B,3,4)
    proj = jnp.einsum('bij,bjk->bik', intrinsics, pose_mat)       # (B,3,4)
    rot, tr = proj[:, :, :3], proj[:, :, 3:]
    pc = jnp.einsum('bij,bjn->bin', rot, cam) + tr                # (B,3,HW)

    X, Y, Z = pc[:, 0], pc[:, 1], pc[:, 2]
    Z = jnp.maximum(Z, 1e-3)
    x_norm = 2.0 * (X / Z) / (W - 1) - 1.0
    y_norm = 2.0 * (Y / Z) / (H - 1) - 1.0
    grid = jnp.stack([x_norm, y_norm], axis=2).reshape(B, H, W, 2)

    warped = bilinear_sample(img, grid)
    valid = (jnp.max(jnp.abs(grid), axis=-1) <= 1.0).astype(jnp.float32)
    mask = valid[:, None]  # (B,1,H,W)
    return warped, mask


def area_downscale(img, h, w):
    # TODO(synk): only integer-factor 'area' interpolation is supported here.
    B, C, H, W = img.shape
    fh, fw = H // h, W // w
    return img.reshape(B, C, h, fh, w, fw).mean(axis=(3, 5))


# ----------------------------------------------------------------------------
# Forward pass (mirrors photometric_reconstruction_loss.forward)
# ----------------------------------------------------------------------------
def photometric_reconstruction_loss(tgt_img, ref_imgs, depth, poses, intrinsics):
    if not isinstance(depth, (list, tuple)):
        depth = [depth]
    R = len(ref_imgs)
    n_scales = len(depth)

    total_ploss = jnp.float32(0.0)
    total_sloss = jnp.float32(0.0)
    total_smloss = jnp.float32(0.0)
    warped_results = [[None] * n_scales for _ in range(R)]
    mask_results = [[None] * n_scales for _ in range(R)]

    for s, d in enumerate(depth):
        b, _, h, w = d.shape
        if tgt_img.shape[2] != h:
            downscale = tgt_img.shape[2] / h
            tgt_s = area_downscale(tgt_img, h, w)
            refs_s = [area_downscale(r, h, w) for r in ref_imgs]
            intr_s = intrinsics.at[:, 0, 0].divide(downscale)
            intr_s = intr_s.at[:, 1, 1].divide(downscale)
            intr_s = intr_s.at[:, 0, 2].divide(downscale)
            intr_s = intr_s.at[:, 1, 2].divide(downscale)
        else:
            tgt_s, refs_s, intr_s = tgt_img, list(ref_imgs), intrinsics

        # Warp every ref image at this scale, then run ONE fused loss kernel
        # over all (ref, batch) slices stacked along the grid axis.
        warped_list, mask_list = [], []
        for r in range(R):
            ref_warped, mask = inverse_warp(refs_s[r], d, poses[r], intr_s)
            warped_results[r][s] = ref_warped
            mask_results[r][s] = mask
            warped_list.append(ref_warped)
            mask_list.append(mask)

        warped_all = jnp.concatenate(warped_list, axis=0)      # (R*B,C,h,w)
        mask_all = jnp.concatenate(mask_list, axis=0)          # (R*B,1,h,w)
        tgt_all = jnp.concatenate([tgt_s] * R, axis=0)         # (R*B,C,h,w)
        depth_all = jnp.concatenate([d] * R, axis=0)           # (R*B,1,h,w)

        ploss, sloss, smloss = pallas_pair_losses(
            warped_all, tgt_all, mask_all, depth_all, b)

        total_ploss = total_ploss + ploss
        total_sloss = total_sloss + sloss
        total_smloss = total_smloss + smloss

    return total_ploss, total_sloss, total_smloss, warped_results, mask_results


# ----------------------------------------------------------------------------
if __name__ == "__main__":
    key = jax.random.PRNGKey(0)
    B, C, H, W = 2, 3, 16, 16
    n_refs = 2

    k = jax.random.split(key, 6)
    tgt_img = jax.random.uniform(k[0], (B, C, H, W), jnp.float32)
    ref_imgs = [jax.random.uniform(k[1], (B, C, H, W), jnp.float32),
                jax.random.uniform(k[2], (B, C, H, W), jnp.float32)]
    depth = 1.0 + 5.0 * jax.nn.sigmoid(
        jax.random.normal(k[3], (B, 1, H, W), jnp.float32))
    poses = [0.05 * jax.random.normal(k[4], (B, 6), jnp.float32),
             0.05 * jax.random.normal(k[5], (B, 6), jnp.float32)]
    fx = fy = W / 2.0
    cx, cy = (W - 1) / 2.0, (H - 1) / 2.0
    intrinsics = jnp.broadcast_to(
        jnp.array([[fx, 0.0, cx], [0.0, fy, cy], [0.0, 0.0, 1.0]],
                  jnp.float32), (B, 3, 3))

    total_ploss, total_sloss, total_smloss, warped_results, mask_results = \
        photometric_reconstruction_loss(tgt_img, ref_imgs, depth, poses,
                                        intrinsics)

    jax.block_until_ready((total_ploss, total_sloss, total_smloss))
    jax.block_until_ready(warped_results)
    jax.block_until_ready(mask_results)

    assert jnp.isfinite(total_ploss) and jnp.isfinite(total_sloss) \
        and jnp.isfinite(total_smloss)
    print("KERNEL_OK")
</pallas_src>

<mosaic_0001>
module attributes {stable_mosaic.version = 11 : i64} {
  func.func @_loss_kernel(%arg0: i32, %arg1: memref<1x3x16x16xf32, #tpu.memory_space<vmem>>, %arg2: memref<1x3x16x16xf32, #tpu.memory_space<vmem>>, %arg3: memref<1x1x16x16xf32, #tpu.memory_space<vmem>>, %arg4: memref<1x1x16x16xf32, #tpu.memory_space<vmem>>, %arg5: memref<1x8x128xf32, #tpu.memory_space<vmem>>) attributes {dimension_semantics = [#tpu.dimension_semantics<parallel>], iteration_bounds = array<i64: 4>, scalar_prefetch = 0 : i64, scratch_operands = 0 : i64, tpu.core_type = #tpu.core_type<tc>, window_params = [{transform_indices = @transform_0, window_bounds = array<i64: 1, 3, 16, 16>}, {transform_indices = @transform_1, window_bounds = array<i64: 1, 3, 16, 16>}, {transform_indices = @transform_2, window_bounds = array<i64: 1, 1, 16, 16>}, {transform_indices = @transform_3, window_bounds = array<i64: 1, 1, 16, 16>}, {transform_indices = @transform_4, window_bounds = array<i64: 1, 8, 128>}]} {
    %c0 = arith.constant 0 : index
    %c0_0 = arith.constant 0 : index
    %c0_1 = arith.constant 0 : index
    %c0_2 = arith.constant 0 : index
    %0 = vector.load %arg1[%c0, %c0_0, %c0_1, %c0_2] : memref<1x3x16x16xf32, #tpu.memory_space<vmem>>, vector<1x3x16x16xf32>
    %1 = vector.shape_cast %0 : vector<1x3x16x16xf32> to vector<3x16x16xf32>
    %c0_3 = arith.constant 0 : index
    %c0_4 = arith.constant 0 : index
    %c0_5 = arith.constant 0 : index
    %c0_6 = arith.constant 0 : index
    %2 = vector.load %arg2[%c0_3, %c0_4, %c0_5, %c0_6] : memref<1x3x16x16xf32, #tpu.memory_space<vmem>>, vector<1x3x16x16xf32>
    %3 = vector.shape_cast %2 : vector<1x3x16x16xf32> to vector<3x16x16xf32>
    %c0_7 = arith.constant 0 : index
    %c0_8 = arith.constant 0 : index
    %c0_9 = arith.constant 0 : index
    %c0_10 = arith.constant 0 : index
    %4 = vector.load %arg3[%c0_7, %c0_8, %c0_9, %c0_10] : memref<1x1x16x16xf32, #tpu.memory_space<vmem>>, vector<1x1x16x16xf32>
    %5 = vector.shape_cast %4 : vector<1x1x16x16xf32> to vector<1x16x16xf32>
    %c0_11 = arith.constant 0 : index
    %c0_12 = arith.constant 0 : index
    %c0_13 = arith.constant 0 : index
    %c0_14 = arith.constant 0 : index
    %6 = vector.load %arg4[%c0_11, %c0_12, %c0_13, %c0_14] : memref<1x1x16x16xf32, #tpu.memory_space<vmem>>, vector<1x1x16x16xf32>
    %7 = vector.shape_cast %6 : vector<1x1x16x16xf32> to vector<1x16x16xf32>
    %8 = vector.broadcast %5 : vector<1x16x16xf32> to vector<3x16x16xf32>
    %9 = arith.mulf %1, %8 : vector<3x16x16xf32>
    %10 = vector.broadcast %5 : vector<1x16x16xf32> to vector<3x16x16xf32>
    %11 = arith.mulf %3, %10 : vector<3x16x16xf32>
    %12 = arith.subf %9, %11 : vector<3x16x16xf32>
    %13 = math.absf %12 : vector<3x16x16xf32>
    %cst = arith.constant 1.000000e+00 : f32
    %14 = vector.broadcast %cst : f32 to vector<3x16x16xf32>
    %15 = arith.cmpf olt, %13, %14 : vector<3x16x16xf32>
    %cst_15 = arith.constant 5.000000e-01 : f32
    %16 = vector.broadcast %cst_15 : f32 to vector<3x16x16xf32>
    %17 = arith.mulf %16, %12 : vector<3x16x16xf32>
    %18 = arith.mulf %17, %12 : vector<3x16x16xf32>
    %cst_16 = arith.constant 5.000000e-01 : f32
    %19 = vector.broadcast %cst_16 : f32 to vector<3x16x16xf32>
    %20 = arith.subf %13, %19 : vector<3x16x16xf32>
    %21 = arith.select %15, %18, %20 : vector<3x16x16xi1>, vector<3x16x16xf32>
    %22 = vector.shape_cast %21 : vector<3x16x16xf32> to vector<1x3x16x16xf32>
    %cst_17 = arith.constant dense<0.000000e+00> : vector<1xf32>
    %23 = vector.multi_reduction <add>, %22, %cst_17 [1, 2, 3] : vector<1x3x16x16xf32> to vector<1xf32>
    %24 = vector.shape_cast %23 : vector<1xf32> to vector<1x1x1x1xf32>
    %25 = vector.extract %24[0, 0, 0, 0] : f32 from vector<1x1x1x1xf32>
    %26 = vector.extract_strided_slice %9 {offsets = [0, 0, 1], sizes = [3, 16, 15], strides = [1, 1, 1]} : vector<3x16x16xf32> to vector<3x16x15xf32>
    %27 = vector.extract_strided_slice %9 {offsets = [0, 0, 0], sizes = [3, 16, 15], strides = [1, 1, 1]} : vector<3x16x16xf32> to vector<3x16x15xf32>
    %28 = arith.subf %26, %27 : vector<3x16x15xf32>
    %29 = vector.extract_strided_slice %11 {offsets = [0, 0, 1], sizes = [3, 16, 15], strides = [1, 1, 1]} : vector<3x16x16xf32> to vector<3x16x15xf32>
    %30 = vector.extract_strided_slice %11 {offsets = [0, 0, 0], sizes = [3, 16, 15], strides = [1, 1, 1]} : vector<3x16x16xf32> to vector<3x16x15xf32>
    %31 = arith.subf %29, %30 : vector<3x16x15xf32>
    %32 = arith.subf %28, %31 : vector<3x16x15xf32>
    %33 = math.absf %32 : vector<3x16x15xf32>
    %cst_18 = arith.constant 1.000000e+00 : f32
    %34 = vector.broadcast %cst_18 : f32 to vector<3x16x15xf32>
    %35 = arith.cmpf olt, %33, %34 : vector<3x16x15xf32>
    %cst_19 = arith.constant 5.000000e-01 : f32
    %36 = vector.broadcast %cst_19 : f32 to vector<3x16x15xf32>
    %37 = arith.mulf %36, %32 : vector<3x16x15xf32>
    %38 = arith.mulf %37, %32 : vector<3x16x15xf32>
    %cst_20 = arith.constant 5.000000e-01 : f32
    %39 = vector.broadcast %cst_20 : f32 to vector<3x16x15xf32>
    %40 = arith.subf %33, %39 : vector<3x16x15xf32>
    %41 = arith.select %35, %38, %40 : vector<3x16x15xi1>, vector<3x16x15xf32>
    %42 = vector.shape_cast %41 : vector<3x16x15xf32> to vector<1x3x16x15xf32>
    %cst_21 = arith.constant dense<0.000000e+00> : vector<1xf32>
    %43 = vector.multi_reduction <add>, %42, %cst_21 [1, 2, 3] : vector<1x3x16x15xf32> to vector<1xf32>
    %44 = vector.shape_cast %43 : vector<1xf32> to vector<1x1x1x1xf32>
    %45 = vector.extract %44[0, 0, 0, 0] : f32 from vector<1x1x1x1xf32>
    %46 = vector.extract_strided_slice %9 {offsets = [0, 1, 0], sizes = [3, 15, 16], strides = [1, 1, 1]} : vector<3x16x16xf32> to vector<3x15x16xf32>
    %47 = vector.extract_strided_slice %9 {offsets = [0, 0, 0], sizes = [3, 15, 16], strides = [1, 1, 1]} : vector<3x16x16xf32> to vector<3x15x16xf32>
    %48 = arith.subf %46, %47 : vector<3x15x16xf32>
    %49 = vector.extract_strided_slice %11 {offsets = [0, 1, 0], sizes = [3, 15, 16], strides = [1, 1, 1]} : vector<3x16x16xf32> to vector<3x15x16xf32>
    %50 = vector.extract_strided_slice %11 {offsets = [0, 0, 0], sizes = [3, 15, 16], strides = [1, 1, 1]} : vector<3x16x16xf32> to vector<3x15x16xf32>
    %51 = arith.subf %49, %50 : vector<3x15x16xf32>
    %52 = arith.subf %48, %51 : vector<3x15x16xf32>
    %53 = math.absf %52 : vector<3x15x16xf32>
    %cst_22 = arith.constant 1.000000e+00 : f32
    %54 = vector.broadcast %cst_22 : f32 to vector<3x15x16xf32>
    %55 = arith.cmpf olt, %53, %54 : vector<3x15x16xf32>
    %cst_23 = arith.constant 5.000000e-01 : f32
    %56 = vector.broadcast %cst_23 : f32 to vector<3x15x16xf32>
    %57 = arith.mulf %56, %52 : vector<3x15x16xf32>
    %58 = arith.mulf %57, %52 : vector<3x15x16xf32>
    %cst_24 = arith.constant 5.000000e-01 : f32
    %59 = vector.broadcast %cst_24 : f32 to vector<3x15x16xf32>
    %60 = arith.subf %53, %59 : vector<3x15x16xf32>
    %61 = arith.select %55, %58, %60 : vector<3x15x16xi1>, vector<3x15x16xf32>
    %62 = vector.shape_cast %61 : vector<3x15x16xf32> to vector<1x3x15x16xf32>
    %cst_25 = arith.constant dense<0.000000e+00> : vector<1xf32>
    %63 = vector.multi_reduction <add>, %62, %cst_25 [1, 2, 3] : vector<1x3x15x16xf32> to vector<1xf32>
    %64 = vector.shape_cast %63 : vector<1xf32> to vector<1x1x1x1xf32>
    %65 = vector.extract %64[0, 0, 0, 0] : f32 from vector<1x1x1x1xf32>
    %66 = vector.extract_strided_slice %3 {offsets = [0, 0, 0], sizes = [3, 16, 14], strides = [1, 1, 1]} : vector<3x16x16xf32> to vector<3x16x14xf32>
    %67 = vector.extract_strided_slice %3 {offsets = [0, 0, 1], sizes = [3, 16, 14], strides = [1, 1, 1]} : vector<3x16x16xf32> to vector<3x16x14xf32>
    %68 = arith.addf %66, %67 : vector<3x16x14xf32>
    %69 = vector.extract_strided_slice %3 {offsets = [0, 0, 2], sizes = [3, 16, 14], strides = [1, 1, 1]} : vector<3x16x16xf32> to vector<3x16x14xf32>
    %70 = arith.addf %68, %69 : vector<3x16x14xf32>
    %71 = vector.extract_strided_slice %70 {offsets = [0, 0, 0], sizes = [3, 14, 14], strides = [1, 1, 1]} : vector<3x16x14xf32> to vector<3x14x14xf32>
    %72 = vector.extract_strided_slice %70 {offsets = [0, 1, 0], sizes = [3, 14, 14], strides = [1, 1, 1]} : vector<3x16x14xf32> to vector<3x14x14xf32>
    %73 = arith.addf %71, %72 : vector<3x14x14xf32>
    %74 = vector.extract_strided_slice %70 {offsets = [0, 2, 0], sizes = [3, 14, 14], strides = [1, 1, 1]} : vector<3x16x14xf32> to vector<3x14x14xf32>
    %75 = arith.addf %73, %74 : vector<3x14x14xf32>
    %cst_26 = arith.constant 0.111111112 : f32
    %76 = vector.broadcast %cst_26 : f32 to vector<3x14x14xf32>
    %77 = arith.mulf %75, %76 : vector<3x14x14xf32>
    %78 = vector.extract_strided_slice %1 {offsets = [0, 0, 0], sizes = [3, 16, 14], strides = [1, 1, 1]} : vector<3x16x16xf32> to vector<3x16x14xf32>
    %79 = vector.extract_strided_slice %1 {offsets = [0, 0, 1], sizes = [3, 16, 14], strides = [1, 1, 1]} : vector<3x16x16xf32> to vector<3x16x14xf32>
    %80 = arith.addf %78, %79 : vector<3x16x14xf32>
    %81 = vector.extract_strided_slice %1 {offsets = [0, 0, 2], sizes = [3, 16, 14], strides = [1, 1, 1]} : vector<3x16x16xf32> to vector<3x16x14xf32>
    %82 = arith.addf %80, %81 : vector<3x16x14xf32>
    %83 = vector.extract_strided_slice %82 {offsets = [0, 0, 0], sizes = [3, 14, 14], strides = [1, 1, 1]} : vector<3x16x14xf32> to vector<3x14x14xf32>
    %84 = vector.extract_strided_slice %82 {offsets = [0, 1, 0], sizes = [3, 14, 14], strides = [1, 1, 1]} : vector<3x16x14xf32> to vector<3x14x14xf32>
    %85 = arith.addf %83, %84 : vector<3x14x14xf32>
    %86 = vector.extract_strided_slice %82 {offsets = [0, 2, 0], sizes = [3, 14, 14], strides = [1, 1, 1]} : vector<3x16x14xf32> to vector<3x14x14xf32>
    %87 = arith.addf %85, %86 : vector<3x14x14xf32>
    %cst_27 = arith.constant 0.111111112 : f32
    %88 = vector.broadcast %cst_27 : f32 to vector<3x14x14xf32>
    %89 = arith.mulf %87, %88 : vector<3x14x14xf32>
    %90 = arith.mulf %3, %3 : vector<3x16x16xf32>
    %91 = vector.extract_strided_slice %90 {offsets = [0, 0, 0], sizes = [3, 16, 14], strides = [1, 1, 1]} : vector<3x16x16xf32> to vector<3x16x14xf32>
    %92 = vector.extract_strided_slice %90 {offsets = [0, 0, 1], sizes = [3, 16, 14], strides = [1, 1, 1]} : vector<3x16x16xf32> to vector<3x16x14xf32>
    %93 = arith.addf %91, %92 : vector<3x16x14xf32>
    %94 = vector.extract_strided_slice %90 {offsets = [0, 0, 2], sizes = [3, 16, 14], strides = [1, 1, 1]} : vector<3x16x16xf32> to vector<3x16x14xf32>
    %95 = arith.addf %93, %94 : vector<3x16x14xf32>
    %96 = vector.extract_strided_slice %95 {offsets = [0, 0, 0], sizes = [3, 14, 14], strides = [1, 1, 1]} : vector<3x16x14xf32> to vector<3x14x14xf32>
    %97 = vector.extract_strided_slice %95 {offsets = [0, 1, 0], sizes = [3, 14, 14], strides = [1, 1, 1]} : vector<3x16x14xf32> to vector<3x14x14xf32>
    %98 = arith.addf %96, %97 : vector<3x14x14xf32>
    %99 = vector.extract_strided_slice %95 {offsets = [0, 2, 0], sizes = [3, 14, 14], strides = [1, 1, 1]} : vector<3x16x14xf32> to vector<3x14x14xf32>
    %100 = arith.addf %98, %99 : vector<3x14x14xf32>
    %cst_28 = arith.constant 0.111111112 : f32
    %101 = vector.broadcast %cst_28 : f32 to vector<3x14x14xf32>
    %102 = arith.mulf %100, %101 : vector<3x14x14xf32>
    %103 = arith.mulf %77, %77 : vector<3x14x14xf32>
    %104 = arith.subf %102, %103 : vector<3x14x14xf32>
    %105 = arith.mulf %1, %1 : vector<3x16x16xf32>
    %106 = vector.extract_strided_slice %105 {offsets = [0, 0, 0], sizes = [3, 16, 14], strides = [1, 1, 1]} : vector<3x16x16xf32> to vector<3x16x14xf32>
    %107 = vector.extract_strided_slice %105 {offsets = [0, 0, 1], sizes = [3, 16, 14], strides = [1, 1, 1]} : vector<3x16x16xf32> to vector<3x16x14xf32>
    %108 = arith.addf %106, %107 : vector<3x16x14xf32>
    %109 = vector.extract_strided_slice %105 {offsets = [0, 0, 2], sizes = [3, 16, 14], strides = [1, 1, 1]} : vector<3x16x16xf32> to vector<3x16x14xf32>
    %110 = arith.addf %108, %109 : vector<3x16x14xf32>
    %111 = vector.extract_strided_slice %110 {offsets = [0, 0, 0], sizes = [3, 14, 14], strides = [1, 1, 1]} : vector<3x16x14xf32> to vector<3x14x14xf32>
    %112 = vector.extract_strided_slice %110 {offsets = [0, 1, 0], sizes = [3, 14, 14], strides = [1, 1, 1]} : vector<3x16x14xf32> to vector<3x14x14xf32>
    %113 = arith.addf %111, %112 : vector<3x14x14xf32>
    %114 = vector.extract_strided_slice %110 {offsets = [0, 2, 0], sizes = [3, 14, 14], strides = [1, 1, 1]} : vector<3x16x14xf32> to vector<3x14x14xf32>
    %115 = arith.addf %113, %114 : vector<3x14x14xf32>
    %cst_29 = arith.constant 0.111111112 : f32
    %116 = vector.broadcast %cst_29 : f32 to vector<3x14x14xf32>
    %117 = arith.mulf %115, %116 : vector<3x14x14xf32>
    %118 = arith.mulf %89, %89 : vector<3x14x14xf32>
    %119 = arith.subf %117, %118 : vector<3x14x14xf32>
    %120 = arith.mulf %3, %1 : vector<3x16x16xf32>
    %121 = vector.extract_strided_slice %120 {offsets = [0, 0, 0], sizes = [3, 16, 14], strides = [1, 1, 1]} : vector<3x16x16xf32> to vector<3x16x14xf32>
    %122 = vector.extract_strided_slice %120 {offsets = [0, 0, 1], sizes = [3, 16, 14], strides = [1, 1, 1]} : vector<3x16x16xf32> to vector<3x16x14xf32>
    %123 = arith.addf %121, %122 : vector<3x16x14xf32>
    %124 = vector.extract_strided_slice %120 {offsets = [0, 0, 2], sizes = [3, 16, 14], strides = [1, 1, 1]} : vector<3x16x16xf32> to vector<3x16x14xf32>
    %125 = arith.addf %123, %124 : vector<3x16x14xf32>
    %126 = vector.extract_strided_slice %125 {offsets = [0, 0, 0], sizes = [3, 14, 14], strides = [1, 1, 1]} : vector<3x16x14xf32> to vector<3x14x14xf32>
    %127 = vector.extract_strided_slice %125 {offsets = [0, 1, 0], sizes = [3, 14, 14], strides = [1, 1, 1]} : vector<3x16x14xf32> to vector<3x14x14xf32>
    %128 = arith.addf %126, %127 : vector<3x14x14xf32>
    %129 = vector.extract_strided_slice %125 {offsets = [0, 2, 0], sizes = [3, 14, 14], strides = [1, 1, 1]} : vector<3x16x14xf32> to vector<3x14x14xf32>
    %130 = arith.addf %128, %129 : vector<3x14x14xf32>
    %cst_30 = arith.constant 0.111111112 : f32
    %131 = vector.broadcast %cst_30 : f32 to vector<3x14x14xf32>
    %132 = arith.mulf %130, %131 : vector<3x14x14xf32>
    %133 = arith.mulf %77, %89 : vector<3x14x14xf32>
    %134 = arith.subf %132, %133 : vector<3x14x14xf32>
    %cst_31 = arith.constant 2.000000e+00 : f32
    %135 = vector.broadcast %cst_31 : f32 to vector<3x14x14xf32>
    %136 = arith.mulf %135, %77 : vector<3x14x14xf32>
    %137 = arith.mulf %136, %89 : vector<3x14x14xf32>
    %cst_32 = arith.constant 9.99999974E-5 : f32
    %138 = vector.broadcast %cst_32 : f32 to vector<3x14x14xf32>
    %139 = arith.addf %137, %138 : vector<3x14x14xf32>
    %cst_33 = arith.constant 2.000000e+00 : f32
    %140 = vector.broadcast %cst_33 : f32 to vector<3x14x14xf32>
    %141 = arith.mulf %140, %134 : vector<3x14x14xf32>
    %cst_34 = arith.constant 8.99999984E-4 : f32
    %142 = vector.broadcast %cst_34 : f32 to vector<3x14x14xf32>
    %143 = arith.addf %141, %142 : vector<3x14x14xf32>
    %144 = arith.mulf %139, %143 : vector<3x14x14xf32>
    %145 = arith.mulf %77, %77 : vector<3x14x14xf32>
    %146 = arith.mulf %89, %89 : vector<3x14x14xf32>
    %147 = arith.addf %145, %146 : vector<3x14x14xf32>
    %cst_35 = arith.constant 9.99999974E-5 : f32
    %148 = vector.broadcast %cst_35 : f32 to vector<3x14x14xf32>
    %149 = arith.addf %147, %148 : vector<3x14x14xf32>
    %150 = arith.addf %104, %119 : vector<3x14x14xf32>
    %cst_36 = arith.constant 8.99999984E-4 : f32
    %151 = vector.broadcast %cst_36 : f32 to vector<3x14x14xf32>
    %152 = arith.addf %150, %151 : vector<3x14x14xf32>
    %153 = arith.mulf %149, %152 : vector<3x14x14xf32>
    %154 = vector.extract_strided_slice %5 {offsets = [0, 0, 0], sizes = [1, 16, 14], strides = [1, 1, 1]} : vector<1x16x16xf32> to vector<1x16x14xf32>
    %155 = vector.extract_strided_slice %5 {offsets = [0, 0, 1], sizes = [1, 16, 14], strides = [1, 1, 1]} : vector<1x16x16xf32> to vector<1x16x14xf32>
    %156 = arith.addf %154, %155 : vector<1x16x14xf32>
    %157 = vector.extract_strided_slice %5 {offsets = [0, 0, 2], sizes = [1, 16, 14], strides = [1, 1, 1]} : vector<1x16x16xf32> to vector<1x16x14xf32>
    %158 = arith.addf %156, %157 : vector<1x16x14xf32>
    %159 = vector.extract_strided_slice %158 {offsets = [0, 0, 0], sizes = [1, 14, 14], strides = [1, 1, 1]} : vector<1x16x14xf32> to vector<1x14x14xf32>
    %160 = vector.extract_strided_slice %158 {offsets = [0, 1, 0], sizes = [1, 14, 14], strides = [1, 1, 1]} : vector<1x16x14xf32> to vector<1x14x14xf32>
    %161 = arith.addf %159, %160 : vector<1x14x14xf32>
    %162 = vector.extract_strided_slice %158 {offsets = [0, 2, 0], sizes = [1, 14, 14], strides = [1, 1, 1]} : vector<1x16x14xf32> to vector<1x14x14xf32>
    %163 = arith.addf %161, %162 : vector<1x14x14xf32>
    %cst_37 = arith.constant 0.111111112 : f32
    %164 = vector.broadcast %cst_37 : f32 to vector<1x14x14xf32>
    %165 = arith.mulf %163, %164 : vector<1x14x14xf32>
    %166 = tpu.reciprocal %153 {approx = true} : vector<3x14x14xf32> -> vector<3x14x14xf32>
    %167 = arith.mulf %144, %166 : vector<3x14x14xf32>
    %cst_38 = arith.constant 1.000000e+00 : f32
    %168 = vector.broadcast %cst_38 : f32 to vector<3x14x14xf32>
    %169 = arith.subf %168, %167 : vector<3x14x14xf32>
    %cst_39 = arith.constant 5.000000e-01 : f32
    %170 = vector.broadcast %cst_39 : f32 to vector<3x14x14xf32>
    %171 = arith.mulf %169, %170 : vector<3x14x14xf32>
    %cst_40 = arith.constant 0.000000e+00 : f32
    %cst_41 = arith.constant 1.000000e+00 : f32
    %172 = vector.broadcast %cst_40 : f32 to vector<3x14x14xf32>
    %173 = arith.maximumf %172, %171 : vector<3x14x14xf32>
    %174 = vector.broadcast %cst_41 : f32 to vector<3x14x14xf32>
    %175 = arith.minimumf %174, %173 : vector<3x14x14xf32>
    %176 = vector.broadcast %165 : vector<1x14x14xf32> to vector<3x14x14xf32>
    %177 = arith.mulf %176, %175 : vector<3x14x14xf32>
    %178 = vector.shape_cast %177 : vector<3x14x14xf32> to vector<1x3x14x14xf32>
    %cst_42 = arith.constant dense<0.000000e+00> : vector<1xf32>
    %179 = vector.multi_reduction <add>, %178, %cst_42 [1, 2, 3] : vector<1x3x14x14xf32> to vector<1xf32>
    %180 = vector.shape_cast %179 : vector<1xf32> to vector<1x1x1x1xf32>
    %181 = vector.extract %180[0, 0, 0, 0] : f32 from vector<1x1x1x1xf32>
    %182 = vector.extract_strided_slice %7 {offsets = [0, 0, 0], sizes = [1, 16, 15], strides = [1, 1, 1]} : vector<1x16x16xf32> to vector<1x16x15xf32>
    %183 = vector.extract_strided_slice %7 {offsets = [0, 0, 1], sizes = [1, 16, 15], strides = [1, 1, 1]} : vector<1x16x16xf32> to vector<1x16x15xf32>
    %184 = arith.subf %182, %183 : vector<1x16x15xf32>
    %185 = vector.extract_strided_slice %7 {offsets = [0, 0, 0], sizes = [1, 15, 16], strides = [1, 1, 1]} : vector<1x16x16xf32> to vector<1x15x16xf32>
    %186 = vector.extract_strided_slice %7 {offsets = [0, 1, 0], sizes = [1, 15, 16], strides = [1, 1, 1]} : vector<1x16x16xf32> to vector<1x15x16xf32>
    %187 = arith.subf %185, %186 : vector<1x15x16xf32>
    %188 = vector.extract_strided_slice %3 {offsets = [0, 0, 0], sizes = [3, 16, 15], strides = [1, 1, 1]} : vector<3x16x16xf32> to vector<3x16x15xf32>
    %189 = vector.extract_strided_slice %3 {offsets = [0, 0, 1], sizes = [3, 16, 15], strides = [1, 1, 1]} : vector<3x16x16xf32> to vector<3x16x15xf32>
    %190 = arith.subf %188, %189 : vector<3x16x15xf32>
    %191 = vector.extract_strided_slice %3 {offsets = [0, 0, 0], sizes = [3, 15, 16], strides = [1, 1, 1]} : vector<3x16x16xf32> to vector<3x15x16xf32>
    %192 = vector.extract_strided_slice %3 {offsets = [0, 1, 0], sizes = [3, 15, 16], strides = [1, 1, 1]} : vector<3x16x16xf32> to vector<3x15x16xf32>
    %193 = arith.subf %191, %192 : vector<3x15x16xf32>
    %194 = math.absf %190 : vector<3x16x15xf32>
    %cst_43 = arith.constant dense<0.000000e+00> : vector<3x16xf32>
    %195 = vector.multi_reduction <add>, %194, %cst_43 [2] : vector<3x16x15xf32> to vector<3x16xf32>
    %196 = vector.shape_cast %195 : vector<3x16xf32> to vector<3x16x1xf32>
    %cst_44 = arith.constant 1.500000e+01 : f32
    %197 = vector.broadcast %cst_44 : f32 to vector<3x16x1xf32>
    %198 = arith.divf %196, %197 : vector<3x16x1xf32>
    %cst_45 = arith.constant 0.000000e+00 : f32
    %199 = vector.broadcast %cst_45 : f32 to vector<3x16x1xf32>
    %200 = arith.subf %199, %198 : vector<3x16x1xf32>
    %201 = math.exp %200 : vector<3x16x1xf32>
    %202 = math.absf %193 : vector<3x15x16xf32>
    %cst_46 = arith.constant dense<0.000000e+00> : vector<3x15xf32>
    %203 = vector.multi_reduction <add>, %202, %cst_46 [2] : vector<3x15x16xf32> to vector<3x15xf32>
    %204 = vector.shape_cast %203 : vector<3x15xf32> to vector<3x15x1xf32>
    %cst_47 = arith.constant 1.600000e+01 : f32
    %205 = vector.broadcast %cst_47 : f32 to vector<3x15x1xf32>
    %206 = arith.divf %204, %205 : vector<3x15x1xf32>
    %cst_48 = arith.constant 0.000000e+00 : f32
    %207 = vector.broadcast %cst_48 : f32 to vector<3x15x1xf32>
    %208 = arith.subf %207, %206 : vector<3x15x1xf32>
    %209 = math.exp %208 : vector<3x15x1xf32>
    %210 = vector.broadcast %184 : vector<1x16x15xf32> to vector<3x16x15xf32>
    %211 = vector.broadcast %201 : vector<3x16x1xf32> to vector<3x16x15xf32>
    %212 = arith.mulf %210, %211 : vector<3x16x15xf32>
    %213 = math.absf %212 : vector<3x16x15xf32>
    %214 = vector.shape_cast %213 : vector<3x16x15xf32> to vector<1x3x16x15xf32>
    %cst_49 = arith.constant dense<0.000000e+00> : vector<1xf32>
    %215 = vector.multi_reduction <add>, %214, %cst_49 [1, 2, 3] : vector<1x3x16x15xf32> to vector<1xf32>
    %216 = vector.shape_cast %215 : vector<1xf32> to vector<1x1x1x1xf32>
    %217 = vector.extract %216[0, 0, 0, 0] : f32 from vector<1x1x1x1xf32>
    %218 = vector.broadcast %187 : vector<1x15x16xf32> to vector<3x15x16xf32>
    %219 = vector.broadcast %209 : vector<3x15x1xf32> to vector<3x15x16xf32>
    %220 = arith.mulf %218, %219 : vector<3x15x16xf32>
    %221 = math.absf %220 : vector<3x15x16xf32>
    %222 = vector.shape_cast %221 : vector<3x15x16xf32> to vector<1x3x15x16xf32>
    %cst_50 = arith.constant dense<0.000000e+00> : vector<1xf32>
    %223 = vector.multi_reduction <add>, %222, %cst_50 [1, 2, 3] : vector<1x3x15x16xf32> to vector<1xf32>
    %224 = vector.shape_cast %223 : vector<1xf32> to vector<1x1x1x1xf32>
    %225 = vector.extract %224[0, 0, 0, 0] : f32 from vector<1x1x1x1xf32>
    %226 = tpu.iota {dimensions = array<i32: 0>} : vector<8x128xi32>
    %227 = tpu.iota {dimensions = array<i32: 1>} : vector<8x128xi32>
    %c0_i32 = arith.constant 0 : i32
    %228 = vector.broadcast %c0_i32 : i32 to vector<8x128xi32>
    %229 = arith.cmpi eq, %226, %228 : vector<8x128xi32>
    %c0_i32_51 = arith.constant 0 : i32
    %230 = vector.broadcast %c0_i32_51 : i32 to vector<8x128xi32>
    %231 = arith.cmpi eq, %227, %230 : vector<8x128xi32>
    %232 = arith.andi %229, %231 : vector<8x128xi1>
    %cst_52 = arith.constant 0.000000e+00 : f32
    %233 = vector.broadcast %25 : f32 to vector<8x128xf32>
    %234 = vector.broadcast %cst_52 : f32 to vector<8x128xf32>
    %235 = arith.select %232, %233, %234 : vector<8x128xi1>, vector<8x128xf32>
    %c0_i32_53 = arith.constant 0 : i32
    %236 = vector.broadcast %c0_i32_53 : i32 to vector<8x128xi32>
    %237 = arith.cmpi eq, %226, %236 : vector<8x128xi32>
    %c1_i32 = arith.constant 1 : i32
    %238 = vector.broadcast %c1_i32 : i32 to vector<8x128xi32>
    %239 = arith.cmpi eq, %227, %238 : vector<8x128xi32>
    %240 = arith.andi %237, %239 : vector<8x128xi1>
    %cst_54 = arith.constant 0.000000e+00 : f32
    %241 = vector.broadcast %45 : f32 to vector<8x128xf32>
    %242 = vector.broadcast %cst_54 : f32 to vector<8x128xf32>
    %243 = arith.select %240, %241, %242 : vector<8x128xi1>, vector<8x128xf32>
    %244 = arith.addf %235, %243 : vector<8x128xf32>
    %c0_i32_55 = arith.constant 0 : i32
    %245 = vector.broadcast %c0_i32_55 : i32 to vector<8x128xi32>
    %246 = arith.cmpi eq, %226, %245 : vector<8x128xi32>
    %c2_i32 = arith.constant 2 : i32
    %247 = vector.broadcast %c2_i32 : i32 to vector<8x128xi32>
    %248 = arith.cmpi eq, %227, %247 : vector<8x128xi32>
    %249 = arith.andi %246, %248 : vector<8x128xi1>
    %cst_56 = arith.constant 0.000000e+00 : f32
    %250 = vector.broadcast %65 : f32 to vector<8x128xf32>
    %251 = vector.broadcast %cst_56 : f32 to vector<8x128xf32>
    %252 = arith.select %249, %250, %251 : vector<8x128xi1>, vector<8x128xf32>
    %253 = arith.addf %244, %252 : vector<8x128xf32>
    %c0_i32_57 = arith.constant 0 : i32
    %254 = vector.broadcast %c0_i32_57 : i32 to vector<8x128xi32>
    %255 = arith.cmpi eq, %226, %254 : vector<8x128xi32>
    %c3_i32 = arith.constant 3 : i32
    %256 = vector.broadcast %c3_i32 : i32 to vector<8x128xi32>
    %257 = arith.cmpi eq, %227, %256 : vector<8x128xi32>
    %258 = arith.andi %255, %257 : vector<8x128xi1>
    %cst_58 = arith.constant 0.000000e+00 : f32
    %259 = vector.broadcast %181 : f32 to vector<8x128xf32>
    %260 = vector.broadcast %cst_58 : f32 to vector<8x128xf32>
    %261 = arith.select %258, %259, %260 : vector<8x128xi1>, vector<8x128xf32>
    %262 = arith.addf %253, %261 : vector<8x128xf32>
    %c0_i32_59 = arith.constant 0 : i32
    %263 = vector.broadcast %c0_i32_59 : i32 to vector<8x128xi32>
    %264 = arith.cmpi eq, %226, %263 : vector<8x128xi32>
    %c4_i32 = arith.constant 4 : i32
    %265 = vector.broadcast %c4_i32 : i32 to vector<8x128xi32>
    %266 = arith.cmpi eq, %227, %265 : vector<8x128xi32>
    %267 = arith.andi %264, %266 : vector<8x128xi1>
    %cst_60 = arith.constant 0.000000e+00 : f32
    %268 = vector.broadcast %217 : f32 to vector<8x128xf32>
    %269 = vector.broadcast %cst_60 : f32 to vector<8x128xf32>
    %270 = arith.select %267, %268, %269 : vector<8x128xi1>, vector<8x128xf32>
    %271 = arith.addf %262, %270 : vector<8x128xf32>
    %c0_i32_61 = arith.constant 0 : i32
    %272 = vector.broadcast %c0_i32_61 : i32 to vector<8x128xi32>
    %273 = arith.cmpi eq, %226, %272 : vector<8x128xi32>
    %c5_i32 = arith.constant 5 : i32
    %274 = vector.broadcast %c5_i32 : i32 to vector<8x128xi32>
    %275 = arith.cmpi eq, %227, %274 : vector<8x128xi32>
    %276 = arith.andi %273, %275 : vector<8x128xi1>
    %cst_62 = arith.constant 0.000000e+00 : f32
    %277 = vector.broadcast %225 : f32 to vector<8x128xf32>
    %278 = vector.broadcast %cst_62 : f32 to vector<8x128xf32>
    %279 = arith.select %276, %277, %278 : vector<8x128xi1>, vector<8x128xf32>
    %280 = arith.addf %271, %279 : vector<8x128xf32>
    %c0_63 = arith.constant 0 : index
    %c0_64 = arith.constant 0 : index
    %c0_65 = arith.constant 0 : index
    %281 = vector.load %arg5[%c0_63, %c0_64, %c0_65] : memref<1x8x128xf32, #tpu.memory_space<vmem>>, vector<1x8x128xf32>
    %282 = vector.shape_cast %281 : vector<1x8x128xf32> to vector<8x128xf32>
    %283 = vector.shape_cast %280 : vector<8x128xf32> to vector<1x8x128xf32>
    tpu.vector_store %arg5[%c0_63, %c0_64, %c0_65], %283 {strides = array<i32>} : memref<1x8x128xf32, #tpu.memory_space<vmem>>, vector<1x8x128xf32>,
    return
  }
  func.func @transform_0(%arg0: i32) -> (i32, i32, i32, i32) {
    %c0_i32 = arith.constant 0 : i32
    %c0_i32_0 = arith.constant 0 : i32
    %c0_i32_1 = arith.constant 0 : i32
    %c0_i32_2 = arith.constant 0 : i32
    return %arg0, %c0_i32, %c0_i32_0, %c0_i32_1 : i32, i32, i32, i32
  }
  func.func @transform_1(%arg0: i32) -> (i32, i32, i32, i32) {
    %c0_i32 = arith.constant 0 : i32
    %c0_i32_0 = arith.constant 0 : i32
    %c0_i32_1 = arith.constant 0 : i32
    %c0_i32_2 = arith.constant 0 : i32
    return %arg0, %c0_i32, %c0_i32_0, %c0_i32_1 : i32, i32, i32, i32
  }
  func.func @transform_2(%arg0: i32) -> (i32, i32, i32, i32) {
    %c0_i32 = arith.constant 0 : i32
    %c0_i32_0 = arith.constant 0 : i32
    %c0_i32_1 = arith.constant 0 : i32
    %c0_i32_2 = arith.constant 0 : i32
    return %arg0, %c0_i32, %c0_i32_0, %c0_i32_1 : i32, i32, i32, i32
  }
  func.func @transform_3(%arg0: i32) -> (i32, i32, i32, i32) {
    %c0_i32 = arith.constant 0 : i32
    %c0_i32_0 = arith.constant 0 : i32
    %c0_i32_1 = arith.constant 0 : i32
    %c0_i32_2 = arith.constant 0 : i32
    return %arg0, %c0_i32, %c0_i32_0, %c0_i32_1 : i32, i32, i32, i32
  }
  func.func @transform_4(%arg0: i32) -> (i32, i32, i32) {
    %c0_i32 = arith.constant 0 : i32
    %c0_i32_0 = arith.constant 0 : i32
    %c0_i32_1 = arith.constant 0 : i32
    return %arg0, %c0_i32, %c0_i32_0 : i32, i32, i32
  }
}

</mosaic_0001>

<bundles_post_ra>
// kernel: tpu_custom_call.1
= control target key start
LH: loop header
LB: loop body
LE: loop exit
PB: predicated region body
PF: predicated region fallthrough
CT: control target
= control target key end

     0   :  { %s3489_s0 = inlined_call_operand.hbm [shape: f32[4,3,16,16], index: 0, kind: input, shape index: {}]   ;;  %s3490_s1 = inlined_call_operand.hbm [shape: f32[4,3,16,16], index: 1, kind: input, shape index: {}]   ;;  %s3491_s2 = inlined_call_operand.hbm [shape: f32[4,1,16,16], index: 2, kind: input, shape index: {}]   ;;  %s3492_s3 = inlined_call_operand.hbm [shape: f32[4,1,16,16], index: 3, kind: input, shape index: {}]   ;;  %s3493_s4 = inlined_call_operand.hbm [shape: f32[4,8,128], index: 4, kind: output, shape index: {}]  }
   0x1   :  { %3540 = sst [smem:[#allocation52_spill]] %s3489_s0 }
   0x2   :  { %3541 = sst [smem:[#allocation53_spill]] %s3490_s1 }
   0x3   :  { %9 = vsyncpa [#allocation3], 0 }
   0x4   :  { %11 = vsyncpa [#allocation3 + $0x1], 0 }
   0x5   :  { %12 = vsyncpa [#allocation6], 0 }
   0x6   :  { %14 = vsyncpa [#allocation6 + $0x1], 0 }
   0x7   :  { %15 = vsyncpa [#allocation9], 0 }
   0x8   :  { %17 = vsyncpa [#allocation9 + $0x1], 0 }
   0x9   :  { %18 = vsyncpa [#allocation4], 0 }
   0xa   :  { %20 = vsyncpa [#allocation4 + $0x1], 0  ;;  %s2233_s15 = smov 0   ;;  %s2235_s16 = smov 0  }
   0xb   :  { %s2237_s17 = smov 0   ;;  %s2239_s18 = smov 0  }
   0xc LB: > { %s2254_s19 = sadd.s32 4294967295, %s2196_s18   ;;  %s1851_s20 = sadd.s32 4294967294, %s2196_s18   ;;  %s2196_s18 = sphi %s2239_s18, %s3699_s18   ;;  %s2192_s17 = sphi %s2237_s17, %s3698_s17   ;;  %s2188_s16 = sphi %s2235_s16, %s3697_s16   ;;  %s2184_s15 = sphi %s2233_s15, %s3696_s15  }
   0xd   : > { %s2258_s21 = sadd.s32 1, %s2196_s18   ;;  %s33_s22 = sadd.s32 1, %s2192_s17 }
   0xe   : > { %s30_s23 = ssub.s32 %s2196_s18, %s2258_s21  ;;  %p40_p0 = scmp.ne.s32.totalorder %s2192_s17, %s2188_s16 }
   0xf   : > { %p31_p1 = scmp.eq.s32.totalorder %s30_s23, 0  ;;  %p41_p2 = scmp.eq.s32.totalorder %s2196_s18, 0 }
  0x10   : > { %p46_p3 = scmp.ne.s32.totalorder %s2188_s16, %s2184_s15  ;;  %p47_p4 = scmp.eq.s32.totalorder %s2254_s19, 0 }
  0x11   : > { %s2270_s24 = scalar_select %p31_p1, %s2192_s17, %s33_s22  }
  0x12   : > { %p42_p5 = por %p41_p2, %p40_p0  ;;  %p2272_p6 = por %p47_p4, %p46_p3 }
  0x13   : > { %3542 = sst [smem:[#allocation15_spill]] %s2270_s24  ;;  %p148_p7 = scmp.eq.s32.totalorder %s2254_s19, 3 }
  0x14   : > { %s3543_s25 = scalar_select %p2272_p6, 1, 0 }
  0x15   : > { %p154_p8 = scmp.eq.s32.totalorder %s1851_s20, 3  ;;  %p1934_p9 = scmp.lt.s32.totalorder %s2196_s18, 4 }
  0x16   : > { %p2278_p10 = por %p148_p7, %p40_p0  ;;  %s2287_s28 = sand.u32 1, %s2192_s17  }
  0x17   : > { %p2282_p11 = por %p154_p8, %p46_p3  ;;  %s1891_s29 = smul.u32 768, %s2196_s18 }
  0x18   : > { %s3544_s26 = scalar_select %p2278_p10, 1, 0 }
  0x19   : > { %s3545_s27 = scalar_select %p2282_p11, 1, 0 }
  0x1a   : > { %s1890_s30 = smul.u32 48, %s2287_s28  ;;  %p2291_p12 = pnand %p1934_p9, %p42_p5 }
  0x1b   : > { %s195_s6 = sand.u32 1, %s2196_s18   ;;  %s3547_s1 = sld [smem:[#allocation53_spill]] }
  0x1c   : > { %s199_s10 = scalar_lea.vmem [#allocation5], %s1890_s30  ;;  %s2308_s12 = scalar_lea.sflag [#allocation6], %s195_s6 }
  0x1d   : > { %s206_s11 = sshll.u32 %s199_s10, 4  ;;  %p2314_p1 = pneg %p2291_p12  ;;  %s2305_s11 = int_to_ptr.vmem [resolvable:$true] %s206_s11 }
  0x21   : > { %s2301_s9 = scalar_lea.hbm %s3547_s1, %s1891_s29  ;;  %s2017_s23 = scalar_lea.hbm %s3547_s1, 3072 }
  0x22   : > { %s2012_s13 = scalar_lea.hbm %s2301_s9, 768  ;;  %p2018_p4 = scmp.lt.s32.totalorder %s2301_s9, %s3547_s1 }
  0x23   : > { %p2013_p0 = scmp.ne.s32.totalorder %s2301_s9, %s2012_s13  ;;  %p2019_p5 = scmp.lt.s32.totalorder %s2017_s23, %s2012_s13 }
  0x25   : > { %p2015_p2 = pnand %p2314_p1, %p2013_p0  ;;  %p2020_p7 = por %p2019_p5, %p2018_p4 }
  0x27   : > { %p2016_p3 = pneg %p2015_p2 }
  0x29   : > { %p2021_p8 = pnand %p2020_p7, %p2016_p3 }
  0x2b   : > { %2024 = shalt.err (!%p2021_p8)
}
  0x2c   : > { %s2025_s6 = scalar_lea.vmem %s2305_s11, 768  ;;  %s2198_s10 = smov [#allocation5]  }
  0x2d   : > { %p2026_p9 = scmp.ne.s32.totalorder %s2305_s11, %s2025_s6  ;;  %s2030_s20 = sshll.u32 %s2198_s10, 4  ;;  %s2031_s20 = int_to_ptr.vmem [resolvable:$false] %s2030_s20 }
  0x2e   : > { %s2032_s22 = scalar_lea.vmem %s2031_s20, 1536  ;;  %p2033_p13 = scmp.lt.s32.totalorder %s2305_s11, %s2031_s20 }
  0x2f   : > { %p2028_p0 = pnand %p2026_p9, %p2314_p1  ;;  %p2034_p11 = scmp.lt.s32.totalorder %s2032_s22, %s2025_s6 }
  0x31   : > { %p2029_p2 = pneg %p2028_p0  ;;  %p2035_p10 = por %p2034_p11, %p2033_p13 }
  0x33   : > { %p2036_p6 = pnand %p2035_p10, %p2029_p2 }
  0x35   : > { %2039 = shalt.err (!%p2036_p6)
}
  0x36   : > { %s3496_s13 = smov 128   ;;  %s3498_s23 = smov 8  }
  0x37   : > { %1923 = dma.hbm_to_vmem [thread:$0]  (!%p2291_p12), %s2301_s9, 768, %s2305_s11, %s2308_s12, %s3496_s13, %s3496_s13, %s3498_s23  }
  0x38   : > { %p256_p10 = scmp.lt.s32.totalorder %s2196_s18, 5  ;;  %s3549_s0 = sld [smem:[#allocation52_spill]] }
  0x39   : > { %p3550_p6 = scmp.ge.s32.totalorder %s2196_s18, 1  ;;  %s178_s20 = scalar_lea.vmem [#allocation2], %s1890_s30 }
  0x3a   : > { %s185_s22 = sshll.u32 %s178_s20, 4  ;;  %s3500_s9 = sshll.u32 %s2287_s28, 4  ;;  %s2356_s22 = int_to_ptr.vmem [resolvable:$true] %s185_s22 }
  0x3b   : > { %p2350_p11 = pnand %p3550_p6, %p256_p10  ;;  %s175_s11 = scalar_lea.sflag [#allocation3], %s2287_s28 }
  0x3d   : > { %s3551_s10 = scalar_select %p2350_p11, 1, 0 }
  0x3e   : > { %s2346_s6 = scalar_lea.hbm %s3549_s0, %s1891_s29  ;;  %s2045_s8 = scalar_lea.hbm %s3549_s0, 3072 }
  0x3f   : > { %s2040_s13 = scalar_lea.hbm %s2346_s6, 768  ;;  %p2046_p5 = scmp.lt.s32.totalorder %s2346_s6, %s3549_s0 }
  0x40   : > { %p2041_p13 = scmp.ne.s32.totalorder %s2346_s6, %s2040_s13  ;;  %p2047_p7 = scmp.lt.s32.totalorder %s2045_s8, %s2040_s13 }
  0x42   : > { %p2043_p3 = pnand %p2041_p13, %p2314_p1  ;;  %p2048_p8 = por %p2047_p7, %p2046_p5 }
  0x44   : > { %p2044_p4 = pneg %p2043_p3 }
  0x46   : > { %p2049_p9 = pnand %p2048_p8, %p2044_p4 }
  0x48   : > { %2052 = shalt.err (!%p2049_p9)
}
  0x49   : > { %s2053_s30 = scalar_lea.vmem %s2356_s22, 768  ;;  %s2201_s20 = smov [#allocation2]  }
  0x4a   : > { %p2054_p0 = scmp.ne.s32.totalorder %s2356_s22, %s2053_s30  ;;  %s2058_s29 = sshll.u32 %s2201_s20, 4  ;;  %s2059_s29 = int_to_ptr.vmem [resolvable:$false] %s2058_s29 }
  0x4b   : > { %s2060_s7 = scalar_lea.vmem %s2059_s29, 1536  ;;  %p2061_p6 = scmp.lt.s32.totalorder %s2356_s22, %s2059_s29 }
  0x4c   : > { %p2056_p2 = pnand %p2054_p0, %p2314_p1  ;;  %p2062_p13 = scmp.lt.s32.totalorder %s2060_s7, %s2053_s30 }
  0x4e   : > { %p2057_p10 = pneg %p2056_p2  ;;  %p2063_p3 = por %p2062_p13, %p2061_p6 }
  0x50   : > { %p2064_p11 = pnand %p2063_p3, %p2057_p10 }
  0x52   : > { %2067 = shalt.err (!%p2064_p11)
}
  0x53   : > { %s3552_s1 = smov 8   ;;  %s3553_s13 = smov 128  }
  0x54   : > { %1920 = dma.hbm_to_vmem [thread:$0]  (!%p2291_p12), %s2346_s6, 768, %s2356_s22, %s175_s11, %s3553_s13, %s3553_s13, %s3552_s1  }
  0x55   : > { %s3501_s23 = sshll.u32 %s2196_s18, 8  ;;  %s220_s29 = scalar_lea.vmem [#allocation7], %s3500_s9 }
  0x56   : > { %s2389_s30 = scalar_lea.hbm %s3491_s2, %s3501_s23  ;;  %s227_s7 = sshll.u32 %s220_s29, 4  ;;  %s228_s7 = int_to_ptr.vmem [resolvable:$true] %s227_s7 }
  0x57   : > { %s2068_s0 = scalar_lea.hbm %s2389_s30, 256  ;;  %s2073_s11 = scalar_lea.hbm %s3491_s2, 1024 }
  0x58   : > { %p2069_p11 = scmp.ne.s32.totalorder %s2389_s30, %s2068_s0  ;;  %p2074_p7 = scmp.lt.s32.totalorder %s2389_s30, %s3491_s2 }
  0x59   : > { %p2075_p8 = scmp.lt.s32.totalorder %s2073_s11, %s2068_s0 }
  0x5a   : > { %p2071_p4 = pnand %p2069_p11, %p2314_p1 }
  0x5b   : > { %p2076_p9 = por %p2075_p8, %p2074_p7 }
  0x5c   : > { %p2072_p5 = pneg %p2071_p4 }
  0x5e   : > { %p2077_p0 = pnand %p2076_p9, %p2072_p5 }
  0x60   : > { %2080 = shalt.err (!%p2077_p0)
}
  0x61   : > { %s2081_s20 = scalar_lea.vmem %s228_s7, 256  ;;  %s2202_s29 = smov [#allocation7]  }
  0x62   : > { %p2082_p2 = scmp.ne.s32.totalorder %s228_s7, %s2081_s20  ;;  %s2086_s9 = sshll.u32 %s2202_s29, 4  ;;  %s2087_s9 = int_to_ptr.vmem [resolvable:$false] %s2086_s9 }
  0x63   : > { %s2088_s23 = scalar_lea.vmem %s2087_s9, 512  ;;  %p2089_p13 = scmp.lt.s32.totalorder %s228_s7, %s2087_s9 }
  0x64   : > { %p2084_p10 = pnand %p2082_p2, %p2314_p1  ;;  %p2090_p3 = scmp.lt.s32.totalorder %s2088_s23, %s2081_s20 }
  0x66   : > { %p2085_p6 = pneg %p2084_p10  ;;  %p2091_p11 = por %p2090_p3, %p2089_p13 }
  0x68   : > { %p2092_p4 = pnand %p2091_p11, %p2085_p6 }
  0x6a   : > { %2095 = shalt.err (!%p2092_p4)
}
  0x6b   : > { %1926 = dma.hbm_to_vmem [thread:$0]  (!%p2291_p12), %s2389_s30, 256, %s228_s7, %s2308_s12, %s3553_s13, %s3553_s13, %s3552_s1  }
  0x6c   : > { %s3554_s0 = sshll.u32 %s2196_s18, 8  ;;  %s3555_s23 = sshll.u32 %s2287_s28, 4 }
  0x6d   : > { %s2418_s9 = scalar_lea.hbm %s3492_s3, %s3554_s0  ;;  %s241_s22 = scalar_lea.vmem [#allocation8], %s3555_s23 }
  0x6e   : > { %s248_s11 = sshll.u32 %s241_s22, 4  ;;  %s238_s8 = scalar_lea.sflag [#allocation9], %s2287_s28  ;;  %s2422_s11 = int_to_ptr.vmem [resolvable:$true] %s248_s11 }
  0x6f   : > { %s2096_s20 = scalar_lea.hbm %s2418_s9, 256  ;;  %s2101_s7 = scalar_lea.hbm %s3492_s3, 1024 }
  0x70   : > { %p2097_p5 = scmp.ne.s32.totalorder %s2418_s9, %s2096_s20  ;;  %p2102_p9 = scmp.lt.s32.totalorder %s2418_s9, %s3492_s3 }
  0x71   : > { %p2103_p0 = scmp.lt.s32.totalorder %s2101_s7, %s2096_s20 }
  0x72   : > { %p2099_p7 = pnand %p2097_p5, %p2314_p1 }
  0x73   : > { %p2104_p2 = por %p2103_p0, %p2102_p9 }
  0x74   : > { %p2100_p8 = pneg %p2099_p7 }
  0x76   : > { %p2105_p10 = pnand %p2104_p2, %p2100_p8 }
  0x78   : > { %2108 = shalt.err (!%p2105_p10)
}
  0x79   : > { %s2109_s28 = scalar_lea.vmem %s2422_s11, 256  ;;  %s2203_s24 = smov [#allocation8]  }
  0x7a   : > { %p2110_p6 = scmp.ne.s32.totalorder %s2422_s11, %s2109_s28  ;;  %s2114_s6 = sshll.u32 %s2203_s24, 4  ;;  %s2115_s6 = int_to_ptr.vmem [resolvable:$false] %s2114_s6 }
  0x7b   : > { %s2116_s23 = scalar_lea.vmem %s2115_s6, 512  ;;  %p2117_p11 = scmp.lt.s32.totalorder %s2422_s11, %s2115_s6 }
  0x7c   : > { %p2112_p13 = pnand %p2110_p6, %p2314_p1  ;;  %p2118_p4 = scmp.lt.s32.totalorder %s2116_s23, %s2109_s28 }
  0x7e   : > { %p2113_p3 = pneg %p2112_p13  ;;  %p2119_p5 = por %p2118_p4, %p2117_p11 }
  0x80   : > { %p2120_p7 = pnand %p2119_p5, %p2113_p3 }
  0x82   : > { %2123 = shalt.err (!%p2120_p7)
}
  0x83   : > { %1929 = dma.hbm_to_vmem [thread:$0]  (!%p2291_p12), %s2418_s9, 256, %s2422_s11, %s238_s8, %s3553_s13, %s3553_s13, %s3552_s1  }
  0x84   : > { %p3556_p1 = scmp.ne.s32.totalorder %s3551_s10, 0 }
  0x86   : > { %260 = sbr.rel (%p3556_p1) target bundleno = 954 (0x3ba), region = 36 }
  0x8b   : > { %s2451_s14 = sand.u32 1, %s2188_s16   ;;  %p3557_p8 = scmp.ne.s32.totalorder %s3543_s25, 0 }
  0x8c   : > { %s1894_s22 = smul.u32 48, %s2451_s14  ;;  %s263_s20 = scalar_lea.sflag [#allocation3], %s2451_s14 }
  0x8e   : > { %s2455_s12 = scalar_lea.vmem [#allocation2], %s1894_s22 }
  0x8f   : > { %2167 = dma.done.wait (%p3557_p8), %s263_s20, 768  }
  0x90   : > { %2169 = vsyncadd (%p3557_p8), %s263_s20, 4294966528  ;;  %s271_s5 = sand.u32 1, %s2254_s19   ;;  %s2462_s1 = scalar_lea.vmem [#allocation5], %s1894_s22 }
  0x91   : > { %s272_s10 = scalar_lea.sflag [#allocation6], %s271_s5 }
  0x92   : > { %2171 = dma.done.wait (%p3557_p8), %s272_s10, 1024  }
  0x93   : > { %2173 = vsyncadd (%p3557_p8), %s272_s10, 4294966272  ;;  %s1863_s13 = sshll.u32 %s2451_s14, 4  ;;  %s290_s11 = scalar_lea.sflag [#allocation9], %s2451_s14 }
  0x94   : > { %s2469_s9 = scalar_lea.vmem [#allocation7], %s1863_s13  ;;  %s2472_s8 = scalar_lea.vmem [#allocation8], %s1863_s13 }
  0x95   : > { %2175 = dma.done.wait (%p3557_p8), %s290_s11, 256  }
  0x96   : > { %2177 = vsyncadd (%p3557_p8), %s290_s11, 4294967040  ;;  %v2479_v0 = vld [vmem:[%s2462_s1 + $0x10] sm:$0xff]  ;;  %v2482_v1 = vld [vmem:[%s2462_s1] sm:$0xff]  ;;  %s2204_s30 = smov 127   ;;  %s2205_s25 = smov 1   ;;  %vm550_vm0 = vcmask 121856  }
  0x97   : > { %709 = vrot.lane.b32.xlu1 %v2479_v0, %s2204_s30  ;;  %705 = vrot.lane.b32.xlu0 %v2482_v1, %s2204_s30  ;;  %v2489_v2 = vld [vmem:[%s2462_s1 + $0x18] sm:$0xff]  ;;  %v2492_v3 = vld [vmem:[%s2462_s1 + $0x8] sm:$0xff]  ;;  %s2206_s7 = smov 126   ;;  %v2598_v27 = vmul.f32 %v2482_v1, %v2482_v1  ;;  %v2630_v31 = vmul.f32 %v2479_v0, %v2479_v0  ;;  %vm662_vm1 = vcmask 1046528   ;;  %vm780_vm2 = vcmask 1045504   ;;  %s1865_s23 = sshll.u32 %s2451_s14, 3 }
  0x98   : > { %v2495_v4 = vld [vmem:[%s2462_s1 + $0x28] sm:$0xff]  ;;  %v2502_v5 = vld [vmem:[%s2462_s1 + $0x20] sm:$0xff]  ;;  %v2531_v14 = vld [vmem:[%s2455_s12 + $0x10] sm:$0xff]  ;;  %v2594_v26 = vmul.f32 %v2492_v3, %v2492_v3  ;;  %v2626_v30 = vmul.f32 %v2489_v2, %v2489_v2  ;;  %vm679_vm3 = vcmask 129024   ;;  %vm403_vm4 = vcmask 130048   ;;  %s1885_s22 = sshll.u32 %s2254_s19, 7 }
  0x99   : > { %v2505_v6 = vld [vmem:[%s2455_s12 + $0x8] sm:$0xff]  ;;  %v2509_v8 = vld [vmem:[%s2455_s12] sm:$0xff]  ;;  %v2542_v17 = vld [vmem:[%s2455_s12 + $0x18] sm:$0xff]  ;;  %v2646_v33 = vmul.f32 %v2531_v14, %v2531_v14  ;;  %v2678_v34 = vmul.f32 %v2495_v4, %v2495_v4  ;;  %v2682_v35 = vmul.f32 %v2502_v5, %v2502_v5  ;;  %vm571_vm8 = vcmask 1040384   ;;  %s1713_s13 = scalar_lea.hbm %s3493_s4, %s1885_s22  ;;  %p3693_p9 = scmp.ne.s32.totalorder %s3544_s26, 0 }
  0x9a   : > { %v346_v7 = vld [vmem:[%s2469_s9 + $0x8] sm:$0xff]  ;;  %v345_v9 = vld [vmem:[%s2469_s9] sm:$0xff]  ;;  %v2606_v28 = vmul.f32 %v2505_v6, %v2505_v6  ;;  %v2610_v29 = vmul.f32 %v2509_v8, %v2509_v8  ;;  %v2642_v32 = vmul.f32 %v2542_v17, %v2542_v17  ;;  %s2207_s19 = smov [#allocation10]  }
  0x9b   : > { %711 = vrot.lane.b32.xlu1 %v2489_v2, %s2204_s30  ;;  %707 = vrot.lane.b32.xlu0 %v2492_v3, %s2204_s30  ;;  %v2517_v10 = vmul.f32 %v346_v7, %v2505_v6  ;;  %v2520_v11 = vmul.f32 %v345_v9, %v2509_v8  ;;  %v2525_v12 = vmul.f32 %v346_v7, %v2492_v3  ;;  %v2553_v20 = vld [vmem:[%s2455_s12 + $0x20] sm:$0xff]  ;;  %v2564_v23 = vld [vmem:[%s2455_s12 + $0x28] sm:$0xff]  ;;  %s332_s12 = scalar_lea.vmem [#allocation10], %s1865_s23 }
  0x9c   : > { %v2528_v13 = vmul.f32 %v345_v9, %v2482_v1  ;;  %v2536_v15 = vmul.f32 %v345_v9, %v2479_v0  ;;  %v2539_v16 = vmul.f32 %v345_v9, %v2531_v14  ;;  %v2547_v18 = vmul.f32 %v346_v7, %v2489_v2  ;;  %s1715_s5 = sshll.u32 %s332_s12, 4  ;;  %s1716_s5 = int_to_ptr.vmem [resolvable:$true] %s1715_s5 }
  0x9d   : > { %3558 = vst [vmem:[#allocation16_spill] sm:$0xff] %v2517_v10  ;;  %3559 = vst [vmem:[#allocation17_spill] sm:$0xff] %v2520_v11  ;;  %v2550_v19 = vmul.f32 %v346_v7, %v2542_v17  ;;  %v2558_v21 = vmul.f32 %v345_v9, %v2502_v5  ;;  %v2561_v22 = vmul.f32 %v345_v9, %v2553_v20  ;;  %s2124_s11 = scalar_lea.vmem %s1716_s5, 128 }
  0x9e   : > { %3560 = vst [vmem:[#allocation18_spill] sm:$0xff] %v2525_v12  ;;  %3561 = vst [vmem:[#allocation19_spill] sm:$0xff] %v2528_v13  ;;  %v2569_v24 = vmul.f32 %v346_v7, %v2495_v4  ;;  %v2572_v25 = vmul.f32 %v346_v7, %v2564_v23  ;;  %v2690_v36 = vmul.f32 %v2564_v23, %v2564_v23  ;;  %p2125_p12 = scmp.ne.s32.totalorder %s1716_s5, %s2124_s11 }
  0x9f   : > { %715 = vrot.lane.b32.xlu1 %v2495_v4, %s2204_s30  ;;  %713 = vrot.lane.b32.xlu0 %v2502_v5, %s2204_s30  ;;  %3562 = vst [vmem:[#allocation20_spill] sm:$0xff] %v2536_v15  ;;  %3563 = vst [vmem:[#allocation21_spill] sm:$0xff] %v2539_v16  ;;  %v2694_v37 = vmul.f32 %v2553_v20, %v2553_v20 }
  0xa0   : > { %3564 = vst [vmem:[#allocation22_spill] sm:$0xff] %v2547_v18  ;;  %3565 = vst [vmem:[#allocation23_spill] sm:$0xff] %v2550_v19  ;;  %p2126_p0 = pnand %p2125_p12, %p3693_p9 }
  0xa1   : > { %3566 = vst [vmem:[#allocation24_spill] sm:$0xff] %v2558_v21  ;;  %3567 = vst [vmem:[#allocation25_spill] sm:$0xff] %v2561_v22 }
  0xa2   : > { %3568 = vst [vmem:[#allocation26_spill] sm:$0xff] %v2569_v24  ;;  %3569 = vst [vmem:[#allocation27_spill] sm:$0xff] %v2572_v25  ;;  %p2127_p2 = pneg %p2126_p0 }
  0xa3   : > { %432 = vrot.lane.b32.xlu1 %v2517_v10, %s2205_s25  ;;  %430 = vrot.lane.b32.xlu0 %v2520_v11, %s2205_s25 }
  0xa7   : > { %462 = vrot.lane.b32.xlu1 %v2525_v12, %s2205_s25  ;;  %460 = vrot.lane.b32.xlu0 %v2528_v13, %s2205_s25 }
  0xab   : > { %464 = vrot.lane.b32.xlu1 %v2536_v15, %s2205_s25  ;;  %434 = vrot.lane.b32.xlu0 %v2539_v16, %s2205_s25 }
  0xaf   : > { %466 = vrot.lane.b32.xlu1 %v2547_v18, %s2205_s25  ;;  %436 = vrot.lane.b32.xlu0 %v2550_v19, %s2205_s25 }
  0xb3   : > { %468 = vrot.lane.b32.xlu1 %v2558_v21, %s2205_s25  ;;  %438 = vrot.lane.b32.xlu0 %v2561_v22, %s2205_s25 }
  0xb7   : > { %470 = vrot.lane.b32.xlu1 %v2569_v24, %s2205_s25  ;;  %440 = vrot.lane.b32.xlu0 %v2572_v25, %s2205_s25 }
  0xbb   : > { %816 = vrot.lane.b32.xlu1 %v2505_v6, %s2204_s30  ;;  %814 = vrot.lane.b32.xlu0 %v2509_v8, %s2204_s30 }
  0xbf   : > { %731 = vrot.lane.b32.xlu1 %v2492_v3, %s2206_s7  ;;  %729 = vrot.lane.b32.xlu0 %v2482_v1, %s2206_s7 }
  0xc3   : > { %820 = vrot.lane.b32.xlu1 %v2542_v17, %s2204_s30  ;;  %818 = vrot.lane.b32.xlu0 %v2531_v14, %s2204_s30 }
  0xc7   : > { %840 = vrot.lane.b32.xlu1 %v2505_v6, %s2206_s7  ;;  %838 = vrot.lane.b32.xlu0 %v2509_v8, %s2206_s7 }
  0xcb   : > { %930 = vrot.lane.b32.xlu1 %v2594_v26, %s2204_s30  ;;  %928 = vrot.lane.b32.xlu0 %v2598_v27, %s2204_s30 }
  0xcf   : > { %1056 = vrot.lane.b32.xlu1 %v2606_v28, %s2204_s30  ;;  %1054 = vrot.lane.b32.xlu0 %v2610_v29, %s2204_s30 }
  0xd3   : > { %735 = vrot.lane.b32.xlu1 %v2489_v2, %s2206_s7  ;;  %733 = vrot.lane.b32.xlu0 %v2479_v0, %s2206_s7 }
  0xd7   : > { %844 = vrot.lane.b32.xlu1 %v2542_v17, %s2206_s7  ;;  %842 = vrot.lane.b32.xlu0 %v2531_v14, %s2206_s7 }
  0xdb   : > { %934 = vrot.lane.b32.xlu1 %v2626_v30, %s2204_s30  ;;  %932 = vrot.lane.b32.xlu0 %v2630_v31, %s2204_s30 }
  0xdf   : > { %954 = vrot.lane.b32.xlu1 %v2594_v26, %s2206_s7  ;;  %952 = vrot.lane.b32.xlu0 %v2598_v27, %s2206_s7 }
  0xe3   : > { %1060 = vrot.lane.b32.xlu1 %v2642_v32, %s2204_s30  ;;  %1058 = vrot.lane.b32.xlu0 %v2646_v33, %s2204_s30 }
  0xe7   : > { %1080 = vrot.lane.b32.xlu1 %v2606_v28, %s2206_s7  ;;  %1078 = vrot.lane.b32.xlu0 %v2610_v29, %s2206_s7 }
  0xeb   : > { %824 = vrot.lane.b32.xlu1 %v2564_v23, %s2204_s30  ;;  %822 = vrot.lane.b32.xlu0 %v2553_v20, %s2204_s30 }
  0xef   : > { %958 = vrot.lane.b32.xlu1 %v2626_v30, %s2206_s7  ;;  %956 = vrot.lane.b32.xlu0 %v2630_v31, %s2206_s7 }
  0xf3   : > { %1084 = vrot.lane.b32.xlu1 %v2642_v32, %s2206_s7  ;;  %1082 = vrot.lane.b32.xlu0 %v2646_v33, %s2206_s7 }
  0xf7   : > { %739 = vrot.lane.b32.xlu1 %v2495_v4, %s2206_s7  ;;  %737 = vrot.lane.b32.xlu0 %v2502_v5, %s2206_s7 }
  0xfb   : > { %848 = vrot.lane.b32.xlu1 %v2564_v23, %s2206_s7  ;;  %846 = vrot.lane.b32.xlu0 %v2553_v20, %s2206_s7 }
  0xff   : > { %938 = vrot.lane.b32.xlu1 %v2678_v34, %s2204_s30  ;;  %936 = vrot.lane.b32.xlu0 %v2682_v35, %s2204_s30 }
 0x103   : > { %1064 = vrot.lane.b32.xlu1 %v2690_v36, %s2204_s30  ;;  %1062 = vrot.lane.b32.xlu0 %v2694_v37, %s2204_s30 }
 0x107   : > { %962 = vrot.lane.b32.xlu1 %v2678_v34, %s2206_s7  ;;  %960 = vrot.lane.b32.xlu0 %v2682_v35, %s2206_s7 }
 0x109   : > { %v2704_v38 = vpop.permute.xlu1 %709  ;;  %v706_v39 = vpop.permute.xlu0 %705 }
 0x10a   : > { %v1477_v52 = vsub.f32 %v2482_v1, %v706_v39  ;;  %v723_v9 = vadd.f32 %v706_v39, %v2482_v1 }
 0x10b   : > { %1088 = vrot.lane.b32.xlu1 %v2690_v36, %s2206_s7  ;;  %1086 = vrot.lane.b32.xlu0 %v2694_v37, %s2206_s7 }
 0x10c   : > { %v1504_v55 = vand.u32 2147483647, %v1477_v52 }
 0x10d   : > { %v2710_v40 = vpop.permute.xlu1 %711  ;;  %v708_v41 = vpop.permute.xlu0 %707 }
 0x10e   : > { %v1478_v56 = vsub.f32 %v2492_v3, %v708_v41  ;;  %v1510_v59 = vsel %vm550_vm0, %v1504_v55, 0.0  ;;  %v724_v7 = vadd.f32 %v708_v41, %v2492_v3 }
 0x110   : > { %v1505_v60 = vand.u32 2147483647, %v1478_v56 }
 0x111   : > { %v2712_v42 = vpop.permute.xlu1 %715  ;;  %v2714_v43 = vpop.permute.xlu0 %713 }
 0x112   : > { %v1513_v63 = vsel %vm550_vm0, %v1505_v60, 0.0 }
 0x115   : > { %v2716_v44 = vpop.permute.xlu1 %432  ;;  %v2718_v45 = vpop.permute.xlu0 %430 }
 0x116   : > { %3570 = vst [vmem:[#allocation28_spill] sm:$0xff] %v2716_v44  ;;  %3571 = vst [vmem:[#allocation29_spill] sm:$0xff] %v2718_v45 }
 0x119   : > { %v2720_v46 = vpop.permute.xlu1 %462  ;;  %v2722_v47 = vpop.permute.xlu0 %460 }
 0x11a   : > { %3572 = vst [vmem:[#allocation30_spill] sm:$0xff] %v2720_v46  ;;  %3573 = vst [vmem:[#allocation31_spill] sm:$0xff] %v2722_v47 }
 0x11d   : > { %v2724_v48 = vpop.permute.xlu1 %464  ;;  %v2726_v49 = vpop.permute.xlu0 %434 }
 0x11e   : > { %3574 = vst [vmem:[#allocation32_spill] sm:$0xff] %v2724_v48  ;;  %3575 = vst [vmem:[#allocation33_spill] sm:$0xff] %v2726_v49 }
 0x121   : > { %v2728_v50 = vpop.permute.xlu1 %466  ;;  %v2730_v51 = vpop.permute.xlu0 %436 }
 0x122   : > { %3576 = vst [vmem:[#allocation34_spill] sm:$0xff] %v2728_v50  ;;  %3577 = vst [vmem:[#allocation35_spill] sm:$0xff] %v2730_v51  ;;  %v2752_v50 = vmul.f32 %v2492_v3, %v2505_v6 }
 0x125   : > { %v2733_v53 = vpop.permute.xlu1 %468  ;;  %v2735_v54 = vpop.permute.xlu0 %438 }
 0x126   : > { %3578 = vst [vmem:[#allocation36_spill] sm:$0xff] %v2733_v53  ;;  %3579 = vst [vmem:[#allocation37_spill] sm:$0xff] %v2735_v54 }
 0x129   : > { %v2738_v57 = vpop.permute.xlu1 %470  ;;  %v2740_v58 = vpop.permute.xlu0 %440 }
 0x12a   : > { %3580 = vst [vmem:[#allocation38_spill] sm:$0xff] %v2738_v57  ;;  %3581 = vst [vmem:[#allocation39_spill] sm:$0xff] %v2740_v58  ;;  %1511 = vadd.xlane.f32.xlu0 %v1510_v59 }
 0x12d   : > { %v817_v61 = vpop.permute.xlu1 %816  ;;  %v815_v62 = vpop.permute.xlu0 %814 }
 0x12e   : > { %v832_v21 = vadd.f32 %v815_v62, %v2509_v8  ;;  %v833_v53 = vadd.f32 %v817_v61, %v2505_v6 }
 0x12f   : > { %1514 = vadd.xlane.f32.xlu1 %v1513_v63 }
 0x131   : > { %v732_v52 = vpop.permute.xlu1 %731  ;;  %v730_v25 = vpop.permute.xlu0 %729 }
 0x132   : > { %v748_v24 = vadd.f32 %v732_v52, %v724_v7  ;;  %v747_v22 = vadd.f32 %v730_v25, %v723_v9 }
 0x134   : > { %v760_v58 = vrot.slane %v748_v24, 1  ;;  %v782_v57 = vrot.slane %v748_v24, 2  ;;  %v759_v55 = vrot.slane %v747_v22, 1  ;;  %v781_v59 = vrot.slane %v747_v22, 2 }
 0x135   : > { %v821_v56 = vpop.permute.xlu1 %820  ;;  %v819_v54 = vpop.permute.xlu0 %818 }
 0x136   : > { %v775_v60 = vadd.f32 %v760_v58, %v748_v24  ;;  %v761_v63 = vsel %vm662_vm1, %v759_v55, %v760_v58  ;;  %v783_v41 = vsel %vm780_vm2, %v781_v59, %v782_v57  ;;  %v2756_v58 = vmul.f32 %v2482_v1, %v2509_v8 }
 0x137   : > { %v774_v39 = vadd.f32 %v761_v63, %v747_v22  ;;  %v835_v16 = vadd.f32 %v821_v56, %v2542_v17 }
 0x138   : > { %v797_v52 = vadd.f32 %v782_v57, %v775_v60 }
 0x139   : > { %v796_v7 = vadd.f32 %v783_v41, %v774_v39  ;;  %v841_v25 = vpop.permute.xlu1 %840  ;;  %v839_v9 = vpop.permute.xlu0 %838 }
 0x13a   : > { %v857_v19 = vadd.f32 %v841_v25, %v833_v53  ;;  %v856_v51 = vadd.f32 %v839_v9, %v832_v21  ;;  %v803_v59 = vmul.f32 0.11111111, %v797_v52 }
 0x13b   : > { %v802_v21 = vmul.f32 0.11111111, %v796_v7 }
 0x13c   : > { %v869_v49 = vrot.slane %v857_v19, 1  ;;  %v890_v62 = vrot.slane %v857_v19, 2  ;;  %v868_v24 = vrot.slane %v856_v51, 1  ;;  %v889_v22 = vrot.slane %v856_v51, 2 }
 0x13d   : > { %v2758_v55 = vpop.permute.xlu1 %930  ;;  %v929_v61 = vpop.permute.xlu0 %928  ;;  %v1295_v25 = vmul.f32 2.0, %v803_v59 }
 0x13e   : > { %v884_v63 = vadd.f32 %v869_v49, %v857_v19  ;;  %v870_v53 = vsel %vm662_vm1, %v868_v24, %v869_v49  ;;  %v891_v6 = vsel %vm780_vm2, %v889_v22, %v890_v62  ;;  %v725_v19 = vadd.f32 %v2704_v38, %v2479_v0 }
 0x13f   : > { %v883_v57 = vadd.f32 %v870_v53, %v856_v51  ;;  %v726_v49 = vadd.f32 %v2710_v40, %v2489_v2  ;;  %v1294_v51 = vmul.f32 2.0, %v802_v21 }
 0x140   : > { %v905_v60 = vadd.f32 %v890_v62, %v884_v63  ;;  %1182 = vrot.lane.b32.xlu1 %v2752_v50, %s2204_s30  ;;  %1180 = vrot.lane.b32.xlu0 %v2756_v58, %s2204_s30  ;;  %v2774_v62 = vmul.f32 %v803_v59, %v803_v59 }
 0x141   : > { %v904_v8 = vadd.f32 %v891_v6, %v883_v57  ;;  %v2766_v41 = vpop.permute.xlu1 %1056  ;;  %v1055_v39 = vpop.permute.xlu0 %1054  ;;  %v2782_v6 = vmul.f32 %v802_v21, %v802_v21 }
 0x142   : > { %v911_v9 = vmul.f32 0.11111111, %v905_v60 }
 0x143   : > { %v910_v7 = vmul.f32 0.11111111, %v904_v8 }
 0x144   : > { %v2772_v52 = vmul.f32 %v1295_v25, %v911_v9  ;;  %v2776_v24 = vmul.f32 %v911_v9, %v911_v9  ;;  %v2778_v22 = vmul.f32 %v911_v9, %v803_v59  ;;  %v834_v59 = vadd.f32 %v819_v54, %v2531_v14 }
 0x145   : > { %v2780_v63 = vmul.f32 %v1294_v51, %v910_v7  ;;  %v736_v53 = vpop.permute.xlu1 %735  ;;  %v734_v57 = vpop.permute.xlu0 %733  ;;  %v2784_v60 = vmul.f32 %v910_v7, %v910_v7  ;;  %v2786_v48 = vmul.f32 %v910_v7, %v802_v21 }
 0x146   : > { %3582 = vst [vmem:[#allocation40_spill] sm:$0xff] %v2772_v52  ;;  %3583 = vst [vmem:[#allocation41_spill] sm:$0xff] %v2778_v22  ;;  %v750_v18 = vadd.f32 %v736_v53, %v726_v49  ;;  %v749_v8 = vadd.f32 %v734_v57, %v725_v19  ;;  %v2790_v25 = vadd.f32 %v2776_v24, %v2774_v62 }
 0x147   : > { %3584 = vst [vmem:[#allocation42_spill] sm:$0xff] %v2780_v63  ;;  %3585 = vst [vmem:[#allocation43_spill] sm:$0xff] %v2786_v48  ;;  %v2796_v9 = vadd.f32 %v2784_v60, %v2782_v6  ;;  %v946_v48 = vadd.f32 %v929_v61, %v2598_v27 }
 0x148   : > { %v763_v51 = vrot.slane %v750_v18, 1  ;;  %v785_v15 = vrot.slane %v750_v18, 2  ;;  %v762_v10 = vrot.slane %v749_v8, 1  ;;  %v784_v44 = vrot.slane %v749_v8, 2 }
 0x149   : > { %v845_v21 = vpop.permute.xlu1 %844  ;;  %v843_v7 = vpop.permute.xlu0 %842 }
 0x14a   : > { %v777_v49 = vadd.f32 %v763_v51, %v750_v18  ;;  %v764_v19 = vsel %vm662_vm1, %v762_v10, %v763_v51  ;;  %v786_v53 = vsel %vm780_vm2, %v784_v44, %v785_v15  ;;  %v859_v57 = vadd.f32 %v845_v21, %v835_v16 }
 0x14b   : > { %v776_v13 = vadd.f32 %v764_v19, %v749_v8  ;;  %v858_v56 = vadd.f32 %v843_v7, %v834_v59  ;;  %v1484_v10 = vrot.slane %v2492_v3, 1  ;;  %v1483_v8 = vrot.slane %v2482_v1, 1 }
 0x14c   : > { %v799_v47 = vadd.f32 %v785_v15, %v777_v49  ;;  %v872_v54 = vrot.slane %v859_v57, 1  ;;  %v893_v12 = vrot.slane %v859_v57, 2 }
 0x14d   : > { %v798_v46 = vadd.f32 %v786_v53, %v776_v13  ;;  %v871_v11 = vrot.slane %v858_v56, 1  ;;  %v892_v45 = vrot.slane %v858_v56, 2  ;;  %v2800_v63 = vpop.permute.xlu1 %934  ;;  %v2802_v52 = vpop.permute.xlu0 %932  ;;  %v947_v13 = vadd.f32 %v2758_v55, %v2594_v26 }
 0x14e   : > { %v805_v18 = vmul.f32 0.11111111, %v799_v47  ;;  %v886_v22 = vadd.f32 %v872_v54, %v859_v57  ;;  %v1485_v53 = vsel %vm662_vm1, %v1483_v8, %v1484_v10 }
 0x14f   : > { %v804_v44 = vmul.f32 0.11111111, %v798_v46  ;;  %v873_v16 = vsel %vm662_vm1, %v871_v11, %v872_v54  ;;  %v894_v15 = vsel %vm780_vm2, %v892_v45, %v893_v12  ;;  %v1479_v46 = vsub.f32 %v2479_v0, %v2704_v38 }
 0x150   : > { %v907_v59 = vadd.f32 %v893_v12, %v886_v22  ;;  %v885_v51 = vadd.f32 %v873_v16, %v858_v56  ;;  %v1297_v21 = vmul.f32 2.0, %v805_v18  ;;  %v1072_v11 = vadd.f32 %v1055_v39, %v2610_v29 }
 0x151   : > { %v955_v7 = vpop.permute.xlu1 %954  ;;  %v953_v49 = vpop.permute.xlu0 %952  ;;  %v1296_v45 = vmul.f32 2.0, %v804_v44  ;;  %v2825_v39 = vmul.f32 %v805_v18, %v805_v18 }
 0x152   : > { %v913_v27 = vmul.f32 0.11111111, %v907_v59  ;;  %v906_v47 = vadd.f32 %v894_v15, %v885_v51  ;;  %v971_v61 = vadd.f32 %v955_v7, %v947_v13  ;;  %v970_v19 = vadd.f32 %v953_v49, %v946_v48 }
 0x153   : > { %v1499_v51 = vsub.f32 %v2492_v3, %v1484_v10 }
 0x154   : > { %v2815_v57 = vmul.f32 %v1297_v21, %v913_v27  ;;  %v912_v26 = vmul.f32 0.11111111, %v906_v47  ;;  %v983_v12 = vrot.slane %v971_v61, 1  ;;  %v1004_v55 = vrot.slane %v971_v61, 2 }
 0x155   : > { %v982_v22 = vrot.slane %v970_v19, 1  ;;  %v1003_v56 = vrot.slane %v970_v19, 2  ;;  %v1061_v54 = vpop.permute.xlu1 %1060  ;;  %v1059_v16 = vpop.permute.xlu0 %1058  ;;  %v2817_v15 = vmul.f32 %v913_v27, %v913_v27  ;;  %v2819_v48 = vmul.f32 %v913_v27, %v805_v18 }
 0x156   : > { %v2821_v13 = vmul.f32 %v912_v26, %v804_v44  ;;  %v2823_v38 = vmul.f32 %v1296_v45, %v912_v26  ;;  %v998_v29 = vadd.f32 %v983_v12, %v971_v61  ;;  %v1073_v21 = vadd.f32 %v2766_v41, %v2606_v28 }
 0x157   : > { %v984_v8 = vsel %vm662_vm1, %v982_v22, %v983_v12  ;;  %v1005_v59 = vsel %vm780_vm2, %v1003_v56, %v1004_v55  ;;  %v2834_v27 = vadd.f32 %v2817_v15, %v2825_v39  ;;  %v1506_v47 = vand.u32 2147483647, %v1479_v46 }
 0x158   : > { %3586 = vst [vmem:[#allocation44_spill] sm:$0xff] %v2823_v38  ;;  %v1019_v7 = vadd.f32 %v1004_v55, %v998_v29  ;;  %v997_v49 = vadd.f32 %v984_v8, %v970_v19  ;;  %v2836_v18 = vmul.f32 %v804_v44, %v804_v44  ;;  %v1498_v12 = vsub.f32 %v2482_v1, %v1485_v53 }
 0x159   : > { %v1081_v45 = vpop.permute.xlu1 %1080  ;;  %v1079_v61 = vpop.permute.xlu0 %1078  ;;  %v2839_v22 = vmul.f32 %v912_v26, %v912_v26  ;;  %v1554_v28 = vand.u32 2147483647, %v1499_v51 }
 0x15a   : > { %v1025_v56 = vmul.f32 0.11111111, %v1019_v7  ;;  %v1018_v3 = vadd.f32 %v1005_v59, %v997_v49  ;;  %v1097_v10 = vadd.f32 %v1081_v45, %v1073_v21  ;;  %v1096_v38 = vadd.f32 %v1079_v61, %v1072_v11 }
 0x15b   : > { %v2843_v41 = vadd.f32 %v2839_v22, %v2836_v18  ;;  %v1553_v26 = vand.u32 2147483647, %v1498_v12  ;;  %v948_v11 = vadd.f32 %v2802_v52, %v2630_v31  ;;  %v1516_v21 = vsel %vm550_vm0, %v1506_v47, 0.0 }
 0x15c   : > { %v1037_v19 = vsub.f32 %v1025_v56, %v2774_v62  ;;  %v1024_v46 = vmul.f32 0.11111111, %v1018_v3  ;;  %v1109_v55 = vrot.slane %v1097_v10, 1  ;;  %v1130_v44 = vrot.slane %v1097_v10, 2 }
 0x15d   : > { %v1108_v29 = vrot.slane %v1096_v38, 1  ;;  %v1129_v8 = vrot.slane %v1096_v38, 2  ;;  %v2846_v1 = vpop.permute.xlu1 %824  ;;  %v823_v53 = vpop.permute.xlu0 %822  ;;  %v949_v49 = vadd.f32 %v2800_v63, %v2626_v30  ;;  %v1562_v12 = vsel %vm679_vm3, %v1554_v28, 0.0 }
 0x15e   : > { %v1036_v59 = vsub.f32 %v1024_v46, %v2782_v6  ;;  %v1124_v51 = vadd.f32 %v1109_v55, %v1097_v10  ;;  %v1559_v31 = vsel %vm403_vm4, %v1553_v26, 0.0  ;;  %v728_v46 = vadd.f32 %v2712_v42, %v2495_v4 }
 0x15f   : > { %v1110_v62 = vsel %vm662_vm1, %v1108_v29, %v1109_v55  ;;  %v1131_v7 = vsel %vm780_vm2, %v1129_v8, %v1130_v44  ;;  %1517 = vadd.xlane.f32.xlu0 %v1516_v21  ;;  %v1075_v55 = vadd.f32 %v1061_v54, %v2642_v32  ;;  %v1074_v29 = vadd.f32 %v1059_v16, %v2646_v33 }
 0x160   : > { %v1145_v45 = vadd.f32 %v1130_v44, %v1124_v51  ;;  %v1123_v61 = vadd.f32 %v1110_v62, %v1096_v38  ;;  %v727_v30 = vadd.f32 %v2714_v43, %v2502_v5  ;;  %v1337_v8 = vadd.f32 0.0001, %v2790_v25 }
 0x161   : > { %v959_v56 = vpop.permute.xlu1 %958  ;;  %v957_v3 = vpop.permute.xlu0 %956  ;;  %v1336_v26 = vadd.f32 0.0001, %v2796_v9 }
 0x162   : > { %v1151_v52 = vmul.f32 0.11111111, %v1145_v45  ;;  %v1144_v6 = vadd.f32 %v1131_v7, %v1123_v61  ;;  %v973_v10 = vadd.f32 %v959_v56, %v949_v49  ;;  %v972_v47 = vadd.f32 %v957_v3, %v948_v11 }
 0x163   : > { %1563 = vadd.xlane.f32.xlu0 %v1562_v12  ;;  %v836_v7 = vadd.f32 %v823_v53, %v2553_v20 }
 0x164   : > { %v1163_v63 = vsub.f32 %v1151_v52, %v2776_v24  ;;  %v1150_v38 = vmul.f32 0.11111111, %v1144_v6  ;;  %v986_v28 = vrot.slane %v973_v10, 1  ;;  %v1007_v44 = vrot.slane %v973_v10, 2  ;;  %1560 = vadd.xlane.f32.xlu1 %v1559_v31 }
 0x165   : > { %v985_v11 = vrot.slane %v972_v47, 1  ;;  %v1006_v51 = vrot.slane %v972_v47, 2  ;;  %v1085_v21 = vpop.permute.xlu1 %1084  ;;  %v1083_v32 = vpop.permute.xlu0 %1082 }
 0x166   : > { %v1343_v54 = vadd.f32 %v1163_v63, %v1037_v19  ;;  %v1162_v33 = vsub.f32 %v1150_v38, %v2784_v60  ;;  %v1000_v16 = vadd.f32 %v986_v28, %v973_v10  ;;  %v1099_v62 = vadd.f32 %v1085_v21, %v1075_v55 }
 0x167   : > { %v987_v24 = vsel %vm662_vm1, %v985_v11, %v986_v28  ;;  %v1008_v49 = vsel %vm780_vm2, %v1006_v51, %v1007_v44  ;;  %v1098_v45 = vadd.f32 %v1083_v32, %v1074_v29 }
 0x168   : > { %v1349_v61 = vadd.f32 0.0009, %v1343_v54  ;;  %v1342_v25 = vadd.f32 %v1162_v33, %v1036_v59  ;;  %v1021_v12 = vadd.f32 %v1007_v44, %v1000_v16  ;;  %v999_v9 = vadd.f32 %v987_v24, %v972_v47 }
 0x169   : > { %v1112_v56 = vrot.slane %v1099_v62, 1  ;;  %v1133_v3 = vrot.slane %v1099_v62, 2  ;;  %v1111_v31 = vrot.slane %v1098_v45, 1  ;;  %v1132_v52 = vrot.slane %v1098_v45, 2  ;;  %v740_v19 = vpop.permute.xlu1 %739  ;;  %v738_v6 = vpop.permute.xlu0 %737 }
 0x16a   : > { %v2871_v60 = vmul.f32 %v1349_v61, %v1337_v8  ;;  %v1348_v10 = vadd.f32 0.0009, %v1342_v25  ;;  %v1027_v55 = vmul.f32 0.11111111, %v1021_v12  ;;  %v1020_v53 = vadd.f32 %v1008_v49, %v999_v9 }
 0x16b   : > { %v1126_v63 = vadd.f32 %v1112_v56, %v1099_v62  ;;  %v1113_v38 = vsel %vm662_vm1, %v1111_v31, %v1112_v56  ;;  %v1134_v29 = vsel %vm780_vm2, %v1132_v52, %v1133_v3  ;;  %v2875_v28 = vadd.f32 %v740_v19, %v728_v46 }
 0x16c   : > { %v2877_v59 = vmul.f32 %v1348_v10, %v1336_v26  ;;  %v837_v47 = vadd.f32 %v2846_v1, %v2564_v23  ;;  %v1039_v44 = vsub.f32 %v1027_v55, %v2825_v39  ;;  %v1026_v11 = vmul.f32 0.11111111, %v1020_v53 }
 0x16d   : > { %v1147_v8 = vadd.f32 %v1133_v3, %v1126_v63  ;;  %v1125_v51 = vadd.f32 %v1113_v38, %v1098_v45  ;;  %v849_v21 = vpop.permute.xlu1 %848  ;;  %v847_v32 = vpop.permute.xlu0 %846  ;;  %v3532_v33 = vrot.slane %v2875_v28, 1  ;;  %v751_v16 = vadd.f32 %v738_v6, %v727_v30 }
 0x16e   : > { %v1038_v54 = vsub.f32 %v1026_v11, %v2836_v18  ;;  %v2884_v62 = vadd.f32 %v849_v21, %v837_v47  ;;  %v860_v24 = vadd.f32 %v847_v32, %v836_v7  ;;  %v3528_v49 = vrot.slane %v2875_v28, 2 }
 0x16f   : > { %v1153_v46 = vmul.f32 0.11111111, %v1147_v8  ;;  %v1146_v26 = vadd.f32 %v1134_v29, %v1125_v51  ;;  %v765_v1 = vrot.slane %v751_v16, 1  ;;  %v787_v61 = vrot.slane %v751_v16, 2 }
 0x170   : > { %v3533_v39 = vrot.slane %v2884_v62, 1  ;;  %v874_v12 = vrot.slane %v860_v24, 1  ;;  %v2891_v30 = vmul.f32 %v2489_v2, %v2542_v17  ;;  %v3530_v56 = vrot.slane %v2884_v62, 2 }
 0x171   : > { %v1165_v45 = vsub.f32 %v1153_v46, %v2817_v15  ;;  %v1152_v25 = vmul.f32 0.11111111, %v1146_v26  ;;  %v939_v9 = vpop.permute.xlu1 %938  ;;  %v937_v18 = vpop.permute.xlu0 %936  ;;  %v767_v7 = vsel %vm662_vm1, %v765_v1, %v3532_v33  ;;  %v895_v19 = vrot.slane %v860_v24, 2 }
 0x172   : > { %v778_v52 = vadd.f32 %v767_v7, %v751_v16  ;;  %v789_v15 = vsel %vm780_vm2, %v787_v61, %v3528_v49  ;;  %v876_v17 = vsel %vm662_vm1, %v874_v12, %v3533_v39  ;;  %v2906_v6 = vmul.f32 %v2479_v0, %v2531_v14  ;;  %v3616_v49 = vld [vmem:[#allocation23_spill] sm:$0xff] }
 0x173   : > { %v1345_v3 = vadd.f32 %v1165_v45, %v1039_v44  ;;  %v1164_v31 = vsub.f32 %v1152_v25, %v2839_v22  ;;  %v1339_v10 = vadd.f32 0.0001, %v2834_v27  ;;  %v1338_v29 = vadd.f32 0.0001, %v2843_v41 }
 0x174   : > { %v800_v63 = vadd.f32 %v789_v15, %v778_v52  ;;  %v887_v47 = vadd.f32 %v876_v17, %v860_v24  ;;  %v950_v44 = vadd.f32 %v937_v18, %v2682_v35  ;;  %v897_v27 = vsel %vm780_vm2, %v895_v19, %v3530_v56 }
 0x175   : > { %v1351_v55 = vadd.f32 0.0009, %v1345_v3  ;;  %v1344_v53 = vadd.f32 %v1164_v31, %v1038_v54  ;;  %1186 = vrot.lane.b32.xlu1 %v2891_v30, %s2204_s30  ;;  %v1065_v22 = vpop.permute.xlu1 %1064  ;;  %v1063_v38 = vpop.permute.xlu0 %1062  ;;  %v951_v21 = vadd.f32 %v939_v9, %v2678_v34 }
 0x176   : > { %v806_v14 = vmul.f32 0.11111111, %v800_v63  ;;  %v908_v51 = vadd.f32 %v897_v27, %v887_v47  ;;  %v1076_v54 = vadd.f32 %v1063_v38, %v2694_v37  ;;  %v1077_v1 = vadd.f32 %v1065_v22, %v2690_v36 }
 0x177   : > { %v2913_v11 = vmul.f32 %v1351_v55, %v1339_v10  ;;  %v1350_v8 = vadd.f32 0.0009, %v1344_v53 }
 0x178   : > { %v1298_v41 = vmul.f32 2.0, %v806_v14  ;;  %v914_v46 = vmul.f32 0.11111111, %v908_v51  ;;  %v1034_v45 = vmul.f32 %v806_v14, %v806_v14 }
 0x179   : > { %v2919_v32 = vmul.f32 %v1350_v8, %v1338_v29  ;;  %v963_v16 = vpop.permute.xlu1 %962  ;;  %1204 = vrot.lane.b32.xlu1 %v2756_v58, %s2206_s7  ;;  %1184 = vrot.lane.b32.xlu0 %v2906_v6, %s2204_s30  ;;  %v961_v35 = vpop.permute.xlu0 %960 }
 0x17a   : > { %v2926_v26 = vadd.f32 %v963_v16, %v951_v21  ;;  %v974_v24 = vadd.f32 %v961_v35, %v950_v44  ;;  %v2929_v34 = vmul.f32 %v914_v46, %v806_v14  ;;  %v2931_v61 = vmul.f32 %v1298_v41, %v914_v46 }
 0x17b   : > { %v1160_v7 = vmul.f32 %v914_v46, %v914_v46  ;;  %v1486_v21 = vrot.slane %v2479_v0, 1 }
 0x17c   : > { %3587 = vst [vmem:[#allocation45_spill] sm:$0xff] %v2929_v34  ;;  %3588 = vst [vmem:[#allocation46_spill] sm:$0xff] %v2931_v61  ;;  %v3529_v37 = vrot.slane %v2926_v26, 1  ;;  %v3526_v25 = vrot.slane %v2926_v26, 2  ;;  %v988_v12 = vrot.slane %v974_v24, 1  ;;  %v1009_v9 = vrot.slane %v974_v24, 2 }
 0x17d   : > { %v1089_v18 = vpop.permute.xlu1 %1088  ;;  %1206 = vrot.lane.b32.xlu0 %v2752_v50, %s2206_s7  ;;  %v1087_v3 = vpop.permute.xlu0 %1086  ;;  %v1334_v19 = vadd.f32 %v1160_v7, %v1034_v45  ;;  %v3624_v34 = vld [vmem:[#allocation39_spill] sm:$0xff] }
 0x17e   : > { %v2937_v31 = vadd.f32 %v1089_v18, %v1077_v1  ;;  %v1100_v36 = vadd.f32 %v1087_v3, %v1076_v54  ;;  %v990_v52 = vsel %vm662_vm1, %v988_v12, %v3529_v37  ;;  %v1011_v10 = vsel %vm780_vm2, %v1009_v9, %v3526_v25  ;;  %v3625_v61 = vld [vmem:[#allocation27_spill] sm:$0xff] }
 0x17f   : > { %v1001_v15 = vadd.f32 %v990_v52, %v974_v24  ;;  %v1487_v54 = vrot.slane %v2489_v2, 1  ;;  %v1340_v35 = vadd.f32 0.0001, %v1334_v19  ;;  %v1480_v12 = vsub.f32 %v2489_v2, %v2710_v40 }
 0x180   : > { %v3531_v17 = vrot.slane %v2937_v31, 1  ;;  %v3527_v55 = vrot.slane %v2937_v31, 2  ;;  %v1114_v53 = vrot.slane %v1100_v36, 1  ;;  %v1135_v63 = vrot.slane %v1100_v36, 2 }
 0x181   : > { %v1022_v22 = vadd.f32 %v1011_v10, %v1001_v15  ;;  %v1488_v46 = vsel %vm662_vm1, %v1486_v21, %v1487_v54  ;;  %v1507_v18 = vand.u32 2147483647, %v1480_v12  ;;  %v1501_v3 = vsub.f32 %v2489_v2, %v1487_v54 }
 0x182   : > { %v1116_v38 = vsel %vm662_vm1, %v1114_v53, %v3531_v17  ;;  %v1137_v47 = vsel %vm780_vm2, %v1135_v63, %v3527_v55  ;;  %v1500_v1 = vsub.f32 %v2479_v0, %v1488_v46  ;;  %v1481_v0 = vsub.f32 %v2502_v5, %v2714_v43  ;;  %v2999_v46 = vld [vmem:[%s2472_s8] sm:$0xff]  ;;  %v3615_v55 = vld [vmem:[#allocation35_spill] sm:$0xff] }
 0x183   : > { %v1127_v29 = vadd.f32 %v1116_v38, %v1100_v36  ;;  %v1028_v44 = vmul.f32 0.11111111, %v1022_v22  ;;  %v1556_v40 = vand.u32 2147483647, %v1501_v3  ;;  %v2974_v15 = vmul.f32 %v2495_v4, %v2564_v23 }
 0x184   : > { %v1555_v9 = vand.u32 2147483647, %v1500_v1  ;;  %v1508_v36 = vand.u32 2147483647, %v1481_v0  ;;  %v2984_v2 = vmul.f32 %v2502_v5, %v2553_v20  ;;  %v3002_v1 = vld [vmem:[%s2472_s8 + $0x8] sm:$0xff]  ;;  %v451_v37 = vsub.f32 %v3616_v49, %v3615_v55  ;;  %s2128_s8 = sshll.u32 %s2207_s19, 4  ;;  %s2129_s8 = int_to_ptr.vmem [resolvable:$false] %s2128_s8 }
 0x185   : > { %v1148_v8 = vadd.f32 %v1137_v47, %v1127_v29  ;;  %v1040_v27 = vsub.f32 %v1028_v44, %v1034_v45  ;;  %v1568_v52 = vsel %vm679_vm3, %v1556_v40, 0.0  ;;  %v3620_v55 = vld [vmem:[#allocation37_spill] sm:$0xff]  ;;  %p2131_p10 = scmp.lt.s32.totalorder %s1716_s5, %s2129_s8 }
 0x186   : > { %v1565_v45 = vsel %vm403_vm4, %v1555_v9, 0.0  ;;  %v1522_v19 = vsel %vm550_vm0, %v1508_v36, 0.0 }
 0x187   : > { %v1154_v14 = vmul.f32 0.11111111, %v1148_v8 }
 0x189   : > { %v1166_v51 = vsub.f32 %v1154_v14, %v1160_v7  ;;  %v1519_v7 = vsel %vm550_vm0, %v1507_v18, 0.0 }
 0x18b   : > { %v1346_v16 = vadd.f32 %v1166_v51, %v1040_v27 }
 0x18d   : > { %v1352_v41 = vadd.f32 0.0009, %v1346_v16 }
 0x18f   : > { %v2956_v24 = vmul.f32 %v1352_v41, %v1340_v35  ;;  %v1489_v35 = vrot.slane %v2502_v5, 1  ;;  %v3534_v41 = vrot.slane %v2495_v4, 1 }
 0x191   : > { %3589 = vst [vmem:[#allocation47_spill] sm:$0xff] %v2956_v24  ;;  %v1491_v40 = vsel %vm662_vm1, %v1489_v35, %v3534_v41  ;;  %v3595_v35 = vld [vmem:[#allocation43_spill] sm:$0xff] }
 0x19c   : > { %1566 = vadd.xlane.f32.xlu0 %v1565_v45 }
 0x19d   : > { %1520 = vadd.xlane.f32.xlu1 %v1519_v7  ;;  %v1470_v7 = vrot.slane %v2999_v46, 1 }
 0x1ae   : > { %1210 = vrot.lane.b32.xlu1 %v2891_v30, %s2206_s7 }
 0x1b2   : > { %1208 = vrot.lane.b32.xlu0 %v2906_v6, %s2206_s7 }
 0x1b3   : > { %v2976_v10 = vpop.xlane.xlu0 %1511 }
 0x1b4   : > { %3590 = vst [vmem:[#allocation48_spill] sm:$0xff] %v2976_v10 }
 0x1b7   : > { %v1181_v43 = vpop.permute.xlu0 %1180 }
 0x1b8   : > { %v2978_v53 = vpop.xlane.xlu1 %1514  ;;  %v1198_v54 = vadd.f32 %v1181_v43, %v2756_v58 }
 0x1b9   : > { %3591 = vst [vmem:[#allocation49_spill] sm:$0xff] %v2978_v53 }
 0x1bc   : > { %v1183_v22 = vpop.permute.xlu1 %1182 }
 0x1bd   : > { %v1199_v21 = vadd.f32 %v1183_v22, %v2752_v50  ;;  %v1471_v50 = vrot.slane %v3002_v1, 1  ;;  %v1502_v22 = vsub.f32 %v2502_v5, %v1491_v40 }
 0x1d1   : > { %1569 = vadd.xlane.f32.xlu0 %v1568_v52 }
 0x1d2   : > { %1523 = vadd.xlane.f32.xlu1 %v1522_v19 }
 0x1e3   : > { %1190 = vrot.lane.b32.xlu1 %v2974_v15, %s2204_s30 }
 0x1e7   : > { %1188 = vrot.lane.b32.xlu0 %v2984_v2, %s2204_s30 }
 0x1e8   : > { %v2988_v63 = vpop.xlane.xlu0 %1517 }
 0x1e9   : > { %3592 = vst [vmem:[#allocation50_spill] sm:$0xff] %v2988_v63 }
 0x1ec   : > { %v1564_v23 = vpop.xlane.xlu0 %1563 }
 0x1ed   : > { %v1579_v38 = vmul.f32 0.0625, %v1564_v23  ;;  %v1561_v29 = vpop.xlane.xlu1 %1560  ;;  %v1472_v23 = vsel %vm662_vm1, %v1470_v7, %v1471_v50 }
 0x1ee   : > { %v1578_v47 = vmul.f32 0.0625, %v1561_v29 }
 0x1ef   : > { %v1585_v44 = vsub.f32 0.0, %v1579_v38 }
 0x1f0   : > { %v1584_v8 = vsub.f32 0.0, %v1578_v47  ;;  %v2990_v14 = vpop.permute.xlu0 %1184 }
 0x1f1   : > { %v1592_v27 = vmul.f32 1.442695, %v1585_v44  ;;  %v2992_v20 = vpop.permute.xlu1 %1186  ;;  %v3016_v44 = vsub.f32 %v3002_v1, %v1471_v50 }
 0x1f2   : > { %v1590_v51 = vmul.f32 1.442695, %v1584_v8  ;;  %v3594_v8 = vld [vmem:[#allocation41_spill] sm:$0xff] }
 0x1f3   : > { %1973 = vpow2.f32 %v1592_v27  ;;  %3593 = vst [vmem:[#allocation51_spill] sm:$0xff] %v3016_v44 }
 0x1f4   : > { %1975 = vpow2.f32 %v1590_v51  ;;  %v1207_v16 = vpop.permute.xlu0 %1206 }
 0x1f5   : > { %v1223_v12 = vadd.f32 %v1207_v16, %v1199_v21  ;;  %v1205_v9 = vpop.permute.xlu1 %1204  ;;  %1977 = vrcp.f32 %v2871_v60  ;;  %v1482_v60 = vsub.f32 %v2495_v4, %v2712_v42  ;;  %v1557_v21 = vand.u32 2147483647, %v1502_v22 }
 0x1f6   : > { %v1222_v18 = vadd.f32 %v1205_v9, %v1198_v54  ;;  %1979 = vrcp.f32 %v2877_v59  ;;  %v3021_v59 = vsub.f32 %v2999_v46, %v1472_v23 }
 0x1f7   : > { %v1235_v45 = vrot.slane %v1223_v12, 1  ;;  %v1256_v3 = vrot.slane %v1223_v12, 2  ;;  %1981 = vrcp.f32 %v2913_v11 }
 0x1f8   : > { %v1234_v58 = vrot.slane %v1222_v18, 1  ;;  %v1255_v0 = vrot.slane %v1222_v18, 2  ;;  %1983 = vrcp.f32 %v2919_v32 }
 0x1f9   : > { %v1250_v36 = vadd.f32 %v1235_v45, %v1223_v12 }
 0x1fa   : > { %v1236_v52 = vsel %vm662_vm1, %v1234_v58, %v1235_v45  ;;  %v1257_v38 = vsel %vm780_vm2, %v1255_v0, %v1256_v3  ;;  %v3596_v45 = vld [vmem:[#allocation40_spill] sm:$0xff]  ;;  %v1571_v58 = vsel %vm403_vm4, %v1557_v21, 0.0  ;;  %v3600_v21 = vld [vmem:[#allocation29_spill] sm:$0xff] }
 0x1fb   : > { %v1271_v19 = vadd.f32 %v1256_v3, %v1250_v36  ;;  %v1249_v43 = vadd.f32 %v1236_v52, %v1222_v18  ;;  %v1509_v18 = vand.u32 2147483647, %v1482_v60  ;;  %v1307_v7 = vadd.f32 0.0001, %v3596_v45  ;;  %v3597_v36 = vld [vmem:[#allocation42_spill] sm:$0xff] }
 0x1fc   : > { %v1306_v52 = vadd.f32 0.0001, %v3597_v36 }
 0x1fd   : > { %v1277_v29 = vmul.f32 0.11111111, %v1271_v19  ;;  %v1270_v47 = vadd.f32 %v1257_v38, %v1249_v43  ;;  %v1525_v38 = vsel %vm550_vm0, %v1509_v18, 0.0  ;;  %v3605_v18 = vld [vmem:[#allocation19_spill] sm:$0xff] }
 0x1ff   : > { %v1289_v27 = vsub.f32 %v1277_v29, %v3594_v8  ;;  %v1276_v51 = vmul.f32 0.11111111, %v1270_v47 }
 0x200   : > { %v1974_v5 = vpop.eup %1973 }
 0x201   : > { %v1976_v54 = vpop.eup %1975  ;;  %v1313_v16 = vmul.f32 2.0, %v1289_v27  ;;  %v1288_v12 = vsub.f32 %v1276_v51, %v3595_v35  ;;  %v1635_v9 = vmul.f32 %v1974_v5, %v3016_v44  ;;  %v3601_v5 = vld [vmem:[#allocation17_spill] sm:$0xff]  ;;  %v3603_v35 = vld [vmem:[#allocation18_spill] sm:$0xff] }
 0x202   : > { %v1634_v50 = vmul.f32 %v1976_v54, %v3021_v59  ;;  %v1978_v23 = vpop.eup %1977  ;;  %v448_v54 = vsub.f32 %v3601_v5, %v3600_v21  ;;  %v3537_v36 = vrot.slane %v3601_v5, 7 }
 0x203   : > { %v1319_v42 = vadd.f32 0.0009, %v1313_v16  ;;  %v1312_v3 = vmul.f32 2.0, %v1288_v12  ;;  %v1641_v0 = vand.u32 2147483647, %v1635_v9  ;;  %v1980_v47 = vpop.eup %1979  ;;  %v3602_v16 = vld [vmem:[#allocation30_spill] sm:$0xff] }
 0x204   : > { %v1640_v40 = vand.u32 2147483647, %v1634_v50  ;;  %v479_v12 = vsub.f32 %v3603_v35, %v3602_v16  ;;  %v3604_v9 = vld [vmem:[#allocation31_spill] sm:$0xff]  ;;  %v3607_v50 = vld [vmem:[#allocation16_spill] sm:$0xff]  ;;  %v3081_v39 = vsub.f32 %v3601_v5, %v3537_v36  ;;  %v453_v36 = vsub.f32 %v3625_v61, %v3624_v34 }
 0x205   : > { %v1325_v19 = vmul.f32 %v1319_v42, %v1307_v7  ;;  %v1318_v43 = vadd.f32 0.0009, %v1312_v3  ;;  %v1647_v22 = vsel %vm679_vm3, %v1641_v0, 0.0  ;;  %v478_v45 = vsub.f32 %v3605_v18, %v3604_v9  ;;  %v3606_v7 = vld [vmem:[#allocation28_spill] sm:$0xff] }
 0x206   : > { %1572 = vadd.xlane.f32.xlu0 %v1571_v58  ;;  %v1646_v29 = vsel %vm403_vm4, %v1640_v40, 0.0  ;;  %v449_v42 = vsub.f32 %v3607_v50, %v3606_v7  ;;  %v3052_v3 = vld [vmem:[%s2469_s9] sm:$0xff]  ;;  %v3621_v40 = vld [vmem:[#allocation25_spill] sm:$0xff] }
 0x207   : > { %v3033_v60 = vmul.f32 %v1978_v23, %v1325_v19  ;;  %v1324_v8 = vmul.f32 %v1318_v43, %v1306_v52  ;;  %1526 = vadd.xlane.f32.xlu1 %v1525_v38  ;;  %v3035_v27 = vadd.f32 %v1647_v22, %v1646_v29  ;;  %v484_v0 = vsub.f32 %v448_v54, %v478_v45  ;;  %v3608_v43 = vld [vmem:[#allocation20_spill] sm:$0xff]  ;;  %v3609_v23 = vld [vmem:[#allocation21_spill] sm:$0xff]  ;;  %v3610_v29 = vld [vmem:[#allocation22_spill] sm:$0xff] }
 0x208   : > { %v485_v58 = vsub.f32 %v449_v42, %v479_v12  ;;  %v3538_v52 = vrot.slane %v3605_v18, 7  ;;  %v3612_v54 = vld [vmem:[#allocation32_spill] sm:$0xff]  ;;  %v3613_v12 = vld [vmem:[#allocation33_spill] sm:$0xff]  ;;  %v3614_v42 = vld [vmem:[#allocation34_spill] sm:$0xff]  ;;  %v452_v41 = vsub.f32 %v3621_v40, %v3620_v55  ;;  %v3626_v34 = vrot.slane %v3608_v43, 7 }
 0x209   : > { %3598 = vst [vmem:[#allocation41_spill] sm:$0xff] %v3033_v60  ;;  %v3037_v51 = vmul.f32 %v1980_v47, %v1324_v8  ;;  %v3064_v8 = vld [vmem:[%s2469_s9 + $0x8] sm:$0xff]  ;;  %v480_v16 = vsub.f32 %v3608_v43, %v3612_v54  ;;  %v450_v9 = vsub.f32 %v3609_v23, %v3613_v12  ;;  %v490_v7 = vand.u32 2147483647, %v484_v0  ;;  %v3619_v47 = vld [vmem:[#allocation24_spill] sm:$0xff]  ;;  %v3622_v38 = vld [vmem:[#allocation38_spill] sm:$0xff] }
 0x20a   : > { %3611 = vst [vmem:[#allocation40_spill] sm:$0xff] %v3064_v8  ;;  %v503_v21 = vmul.f32 0.5, %v485_v58  ;;  %v481_v25 = vsub.f32 %v3610_v29, %v3614_v42  ;;  %v502_v17 = vmul.f32 0.5, %v484_v0  ;;  %v491_v33 = vand.u32 2147483647, %v485_v58  ;;  %v3618_v42 = vld [vmem:[#allocation36_spill] sm:$0xff] }
 0x20b   : > { %3599 = vst [vmem:[#allocation43_spill] sm:$0xff] %v3037_v51  ;;  %v3086_v54 = vsub.f32 %v3605_v18, %v3538_v52  ;;  %v482_v19 = vsub.f32 %v3619_v47, %v3618_v42  ;;  %v3623_v22 = vld [vmem:[#allocation26_spill] sm:$0xff]  ;;  %v1200_v51 = vadd.f32 %v2990_v14, %v2906_v6  ;;  %v486_v52 = vsub.f32 %v450_v9, %v480_v16  ;;  %s1702_s9 = scalar_lea.sflag [#allocation4], %s2451_s14 }
 0x20c   : > { %v483_v44 = vsub.f32 %v3623_v22, %v3622_v38  ;;  %v1201_v12 = vadd.f32 %v2992_v20, %v2891_v30  ;;  %v1872_v60 = vadd.f32 -0.5, %v490_v7  ;;  %v487_v55 = vsub.f32 %v451_v37, %v481_v25  ;;  %v2011_v30 = vld [vmem:[%s2462_s1 + $0x28] sm:$0xff] }
 0x20d   : > { %v508_v38 = vmul.f32 %v502_v17, %v484_v0  ;;  %v1873_v53 = vadd.f32 -0.5, %v491_v33  ;;  %v3106_v10 = vsub.f32 %v3608_v43, %v3626_v34  ;;  %vm3108_vm5 = vcmp.lt.f32.partialorder %v490_v7, 1.0 }
 0x20e   : > { %vm3112_vm6 = vcmp.lt.f32.partialorder %v491_v33, 1.0  ;;  %v3631_v37 = vrot.slane %v3609_v23, 7  ;;  %v488_v17 = vsub.f32 %v452_v41, %v482_v19  ;;  %v489_v20 = vsub.f32 %v453_v36, %v483_v44 }
 0x20f   : > { %v520_v33 = vsel %vm3108_vm5, %v508_v38, %v1872_v60  ;;  %v492_v9 = vand.u32 2147483647, %v486_v52  ;;  %v493_v7 = vand.u32 2147483647, %v487_v55  ;;  %v505_v36 = vmul.f32 0.5, %v487_v55 }
 0x210   : > { %v3119_v25 = vsub.f32 %v3609_v23, %v3631_v37  ;;  %v506_v19 = vmul.f32 0.5, %v488_v17  ;;  %v494_v34 = vand.u32 2147483647, %v488_v17  ;;  %v507_v14 = vmul.f32 0.5, %v489_v20 }
 0x211   : > { %vm3134_vm7 = vcmp.lt.f32.partialorder %v492_v9, 1.0  ;;  %vm3151_vm10 = vcmp.lt.f32.partialorder %v493_v7, 1.0 }
 0x212   : > { %vm3143_vm9 = vcmp.lt.f32.partialorder %v494_v34, 1.0 }
 0x218   : > { %1214 = vrot.lane.b32.xlu1 %v2974_v15, %s2206_s7 }
 0x21c   : > { %1212 = vrot.lane.b32.xlu0 %v2984_v2, %s2206_s7 }
 0x220   : > { %1362 = vrot.lane.b32.xlu0 %v3052_v3, %s2204_s30 }
 0x224   : > { %1364 = vrot.lane.b32.xlu0 %v3064_v8, %s2204_s30 }
 0x225   : > { %v1567_v45 = vpop.xlane.xlu0 %1566 }
 0x226   : > { %v3076_v56 = vpop.xlane.xlu1 %1520  ;;  %v1580_v37 = vmul.f32 0.0625, %v1567_v45  ;;  %v3147_v45 = vmul.f32 %v506_v19, %v488_v17 }
 0x227   : > { %3617 = vst [vmem:[#allocation42_spill] sm:$0xff] %v3076_v56  ;;  %v509_v56 = vmul.f32 %v503_v21, %v485_v58 }
 0x228   : > { %1370 = vrot.lane.b32.xlu0 %v3052_v3, %s2206_s7 }
 0x229   : > { %v1209_v42 = vpop.permute.xlu0 %1208  ;;  %v521_v16 = vsel %vm3112_vm6, %v509_v56, %v1873_v53  ;;  %v3632_v56 = vrot.slane %v2495_v4, 1 }
 0x22a   : > { %v1224_v24 = vadd.f32 %v1209_v42, %v1200_v51  ;;  %v1211_v63 = vpop.permute.xlu1 %1210 }
 0x22b   : > { %v1225_v6 = vadd.f32 %v1211_v63, %v1201_v12  ;;  %v504_v63 = vmul.f32 0.5, %v486_v52  ;;  %v495_v12 = vand.u32 2147483647, %v489_v20  ;;  %v1503_v53 = vsub.f32 %v2011_v30, %v3632_v56 }
 0x22c   : > { %v1237_v51 = vrot.slane %v1224_v24, 1  ;;  %1372 = vrot.lane.b32.xlu0 %v3064_v8, %s2206_s7  ;;  %v1258_v58 = vrot.slane %v1224_v24, 2  ;;  %v3646_v30 = vrot.slane %v3616_v49, 7 }
 0x22d   : > { %v1238_v0 = vrot.slane %v1225_v6, 1  ;;  %v1259_v21 = vrot.slane %v1225_v6, 2  ;;  %v510_v8 = vmul.f32 %v504_v63, %v486_v52  ;;  %v3149_v52 = vadd.f32 -0.5, %v494_v34 }
 0x22e   : > { %vm3158_vm11 = vcmp.lt.f32.partialorder %v495_v12, 1.0  ;;  %v3163_v17 = vadd.f32 -0.5, %v495_v12  ;;  %v3643_v34 = vrot.slane %v3603_v35, 7  ;;  %v3645_v12 = vld [vmem:[#allocation44_spill] sm:$0xff] }
 0x22f   : > { %v1239_v41 = vsel %vm662_vm1, %v1237_v51, %v1238_v0  ;;  %v1252_v44 = vadd.f32 %v1238_v0, %v1225_v6  ;;  %v1260_v60 = vsel %vm780_vm2, %v1258_v58, %v1259_v21  ;;  %v1874_v51 = vadd.f32 -0.5, %v492_v9 }
 0x230   : > { %v1251_v42 = vadd.f32 %v1239_v41, %v1224_v24  ;;  %532 = vrot.lane.b32.xlu0 %v520_v33, %s2204_s30  ;;  %v3138_v24 = vmul.f32 %v505_v36, %v487_v55  ;;  %v3140_v33 = vadd.f32 -0.5, %v493_v7  ;;  %v3155_v55 = vmul.f32 %v507_v14, %v489_v20 }
 0x231   : > { %v1273_v38 = vadd.f32 %v1259_v21, %v1252_v44  ;;  %v1558_v9 = vand.u32 2147483647, %v1503_v53  ;;  %v3641_v36 = vrot.slane %v3607_v50, 7  ;;  %v3642_v7 = vrot.slane %v3601_v5, 7 }
 0x232   : > { %v1272_v11 = vadd.f32 %v1260_v60, %v1251_v42  ;;  %v1309_v20 = vadd.f32 0.0001, %v2815_v57  ;;  %v3644_v14 = vrot.slane %v3605_v18, 7  ;;  %v1308_v60 = vadd.f32 0.0001, %v3645_v12 }
 0x233   : > { %v1279_v6 = vmul.f32 0.11111111, %v1273_v38  ;;  %v574_v19 = vsel %vm571_vm8, %v3642_v7, %v3641_v36  ;;  %v3185_v57 = vsub.f32 %v3607_v50, %v3603_v35  ;;  %v1574_v53 = vsel %vm679_vm3, %v1558_v9, 0.0 }
 0x234   : > { %v1278_v58 = vmul.f32 0.11111111, %v1272_v11  ;;  %534 = vrot.lane.b32.xlu0 %v521_v16, %s2204_s30  ;;  %v1586_v16 = vsub.f32 0.0, %v1580_v37  ;;  %v588_v37 = vsub.f32 %v3607_v50, %v574_v19  ;;  %v1982_v50 = vpop.eup %1981  ;;  %v522_v12 = vsel %vm3134_vm7, %v510_v8, %v1874_v51 }
 0x235   : > { %v1291_v21 = vsub.f32 %v1279_v6, %v2819_v48  ;;  %v3173_v48 = vsub.f32 %v3601_v5, %v3605_v18  ;;  %v3647_v5 = vrot.slane %v3609_v23, 7  ;;  %v368_v19 = vand.u32 2147483647, %v3185_v57 }
 0x236   : > { %v1290_v44 = vsub.f32 %v1278_v58, %v2821_v13  ;;  %v595_v13 = vsel %vm571_vm8, %v3644_v14, %v3643_v34  ;;  %v1594_v11 = vmul.f32 1.442695, %v1586_v16  ;;  %v3648_v58 = vrot.slane %v3610_v29, 7 }
 0x237   : > { %v1315_v42 = vmul.f32 2.0, %v1291_v21  ;;  %v577_v56 = vsel %vm571_vm8, %v3647_v5, %v3646_v30  ;;  %v3649_v21 = vrot.slane %v3608_v43, 7  ;;  %v609_v36 = vsub.f32 %v3603_v35, %v595_v13 }
 0x238   : > { %v1314_v38 = vmul.f32 2.0, %v1290_v44  ;;  %1462 = vrot.lane.b32.xlu0 %v2999_v46, %s2204_s30  ;;  %v3203_v34 = vsub.f32 %v3609_v23, %v3608_v43  ;;  %v367_v32 = vand.u32 2147483647, %v3173_v48  ;;  %v590_v9 = vsub.f32 %v3616_v49, %v577_v56 }
 0x239   : > { %v1321_v18 = vadd.f32 0.0009, %v1315_v42  ;;  %v598_v44 = vsel %vm571_vm8, %v3649_v21, %v3648_v58  ;;  %v578_v42 = vrot.slane %v3621_v40, 7  ;;  %v579_v35 = vrot.slane %v3625_v61, 7 }
 0x23a   : > { %v1320_v6 = vadd.f32 0.0009, %v1314_v38  ;;  %v599_v43 = vrot.slane %v3619_v47, 7  ;;  %v600_v23 = vrot.slane %v3623_v22, 7  ;;  %v611_v14 = vsub.f32 %v3610_v29, %v598_v44 }
 0x23b   : > { %v1327_v7 = vmul.f32 %v1321_v18, %v1309_v20  ;;  %v614_v13 = vsub.f32 %v3081_v39, %v3086_v54  ;;  %1985 = vpow2.f32 %v1594_v11  ;;  %v524_v38 = vsel %vm3143_vm9, %v3147_v45, %v3149_v52 }
 0x23c   : > { %v1326_v16 = vmul.f32 %v1320_v6, %v1308_v60  ;;  %1575 = vadd.xlane.f32.xlu1 %v1574_v53  ;;  %1464 = vrot.lane.b32.xlu0 %v3002_v1, %s2204_s30  ;;  %v615_v60 = vsub.f32 %v588_v37, %v609_v36  ;;  %v523_v30 = vsel %vm3151_vm10, %v3138_v24, %v3140_v33  ;;  %v369_v54 = vand.u32 2147483647, %v3203_v34 }
 0x23d   : > { %v3212_v20 = vmul.f32 %v1982_v50, %v1327_v7  ;;  %v3231_v5 = vsub.f32 %v3616_v49, %v3610_v29  ;;  %v3235_v39 = vsub.f32 %v3621_v40, %v3619_v47  ;;  %v525_v8 = vsel %vm3158_vm11, %v3155_v55, %v3163_v17  ;;  %v1984_v50 = vpop.eup %1983 }
 0x23e   : > { %v379_v51 = vmul.f32 0.5, %v3173_v48  ;;  %v380_v0 = vmul.f32 0.5, %v3185_v57  ;;  %vm3245_vm12 = vcmp.lt.f32.partialorder %v367_v32, 1.0  ;;  %vm3249_vm13 = vcmp.lt.f32.partialorder %v368_v19, 1.0 }
 0x23f   : > { %v580_v4 = vsel %vm571_vm8, %v578_v42, %v579_v35  ;;  %v601_v45 = vsel %vm571_vm8, %v599_v43, %v600_v23  ;;  %v616_v52 = vsub.f32 %v3119_v25, %v3106_v10  ;;  %v617_v55 = vsub.f32 %v590_v9, %v611_v14 }
 0x240   : > { %536 = vrot.lane.b32.xlu0 %v522_v12, %s2204_s30  ;;  %v620_v41 = vand.u32 2147483647, %v614_v13  ;;  %v621_v17 = vand.u32 2147483647, %v615_v60  ;;  %v632_v56 = vmul.f32 0.5, %v614_v13  ;;  %v633_v18 = vmul.f32 0.5, %v615_v60 }
 0x241   : > { %v3259_v53 = vsub.f32 %v3625_v61, %v3623_v22  ;;  %v370_v37 = vand.u32 2147483647, %v3231_v5  ;;  %v381_v6 = vmul.f32 0.5, %v3203_v34  ;;  %v591_v58 = vsub.f32 %v3621_v40, %v578_v42 }
 0x242   : > { %v592_v10 = vsub.f32 %v3625_v61, %v580_v4  ;;  %v612_v25 = vsub.f32 %v3619_v47, %v599_v43  ;;  %v613_v21 = vsub.f32 %v3623_v22, %v601_v45  ;;  %v622_v44 = vand.u32 2147483647, %v616_v52 }
 0x243   : > { %v623_v36 = vand.u32 2147483647, %v617_v55  ;;  %v634_v7 = vmul.f32 0.5, %v616_v52  ;;  %v635_v9 = vmul.f32 0.5, %v617_v55  ;;  %v638_v35 = vmul.f32 %v632_v56, %v614_v13 }
 0x244   : > { %540 = vrot.lane.b32.xlu0 %v524_v38, %s2204_s30  ;;  %v639_v23 = vmul.f32 %v633_v18, %v615_v60  ;;  %v1878_v14 = vadd.f32 -0.5, %v620_v41  ;;  %v1879_v12 = vadd.f32 -0.5, %v621_v17  ;;  %v385_v11 = vmul.f32 %v379_v51, %v3173_v48 }
 0x245   : > { %vm3270_vm14 = vcmp.lt.f32.partialorder %v620_v41, 1.0  ;;  %vm3274_vm15 = vcmp.lt.f32.partialorder %v621_v17, 1.0  ;;  %v3278_v40 = vmul.f32 %v1984_v50, %v1326_v16  ;;  %v386_v22 = vmul.f32 %v380_v0, %v3185_v57 }
 0x246   : > { %v1866_v47 = vadd.f32 -0.5, %v367_v32  ;;  %v1867_v42 = vadd.f32 -0.5, %v368_v19  ;;  %v618_v43 = vsub.f32 %v591_v58, %v612_v25  ;;  %vm3282_vm5 = vcmp.lt.f32.partialorder %v369_v54, 1.0 }
 0x247   : > { %v619_v48 = vsub.f32 %v592_v10, %v613_v21  ;;  %v640_v60 = vmul.f32 %v634_v7, %v616_v52  ;;  %v641_v51 = vmul.f32 %v635_v9, %v617_v55  ;;  %vm3286_vm6 = vcmp.lt.f32.partialorder %v370_v37, 1.0 }
 0x248   : > { %542 = vrot.lane.b32.xlu0 %v525_v8, %s2204_s30  ;;  %v1880_v16 = vadd.f32 -0.5, %v622_v44  ;;  %v1881_v45 = vadd.f32 -0.5, %v623_v36  ;;  %v650_v8 = vsel %vm3270_vm14, %v638_v35, %v1878_v14  ;;  %v651_v57 = vsel %vm3274_vm15, %v639_v23, %v1879_v12  ;;  %v1986_v32 = vpop.eup %1985 }
 0x249   : > { %v382_v19 = vmul.f32 0.5, %v3231_v5  ;;  %v387_v0 = vmul.f32 %v381_v6, %v3203_v34  ;;  %vm3296_vm7 = vcmp.lt.f32.partialorder %v622_v44, 1.0  ;;  %vm3300_vm8 = vcmp.lt.f32.partialorder %v623_v36, 1.0 }
 0x24a   : > { %v1868_v41 = vadd.f32 -0.5, %v369_v54  ;;  %v397_v17 = vsel %vm3245_vm12, %v385_v11, %v1866_v47  ;;  %v398_v56 = vsel %vm3249_vm13, %v386_v22, %v1867_v42  ;;  %v624_v18 = vand.u32 2147483647, %v618_v43 }
 0x24b   : > { %v625_v34 = vand.u32 2147483647, %v619_v48  ;;  %v636_v6 = vmul.f32 0.5, %v618_v43  ;;  %v663_v58 = vrot.slane %v650_v8, 1  ;;  %v664_v10 = vrot.slane %v651_v57, 1 }
 0x24c   : > { %v637_v25 = vmul.f32 0.5, %v619_v48  ;;  %v652_v54 = vsel %vm3296_vm7, %v640_v60, %v1880_v16  ;;  %v653_v49 = vsel %vm3300_vm8, %v641_v51, %v1881_v45  ;;  %v1636_v29 = vmul.f32 %v1986_v32, %v3021_v59 }
 0x24d   : > { %538 = vrot.lane.b32.xlu1 %v523_v30, %s2204_s30  ;;  %v372_v11 = vand.u32 2147483647, %v3259_v53  ;;  %v383_v63 = vmul.f32 0.5, %v3235_v39  ;;  %v388_v24 = vmul.f32 %v382_v19, %v3231_v5  ;;  %v1869_v33 = vadd.f32 -0.5, %v370_v37  ;;  %s2130_s30 = scalar_lea.vmem %s2129_s8, 256 }
 0x24e   : > { %v399_v30 = vsel %vm3282_vm5, %v387_v0, %v1868_v41  ;;  %v404_v21 = vsel %vm403_vm4, %v397_v17, 0.0  ;;  %v405_v44 = vsel %vm403_vm4, %v398_v56, 0.0  ;;  %v1642_v36 = vand.u32 2147483647, %v1636_v29  ;;  %p2132_p6 = scmp.lt.s32.totalorder %s2130_s30, %s2124_s11 }
 0x24f   : > { %v642_v7 = vmul.f32 %v636_v6, %v618_v43  ;;  %v665_v9 = vsel %vm662_vm1, %v663_v58, %v664_v10  ;;  %v666_v50 = vrot.slane %v652_v54, 1  ;;  %v667_v35 = vrot.slane %v653_v49, 1 }
 0x250   : > { %v643_v23 = vmul.f32 %v637_v25, %v619_v48  ;;  %v1882_v14 = vadd.f32 -0.5, %v624_v18  ;;  %v1883_v12 = vadd.f32 -0.5, %v625_v34  ;;  %v1649_v38 = vsel %vm403_vm4, %v1642_v36, 0.0  ;;  %p2133_p13 = por %p2132_p6, %p2131_p10 }
 0x251   : > { %v406_v5 = vadd.f32 %v405_v44, %v404_v21  ;;  %vm3328_vm9 = vcmp.lt.f32.partialorder %v624_v18, 1.0  ;;  %vm3332_vm10 = vcmp.lt.f32.partialorder %v625_v34, 1.0  ;;  %v3337_v22 = vadd.f32 %v1649_v38, %v3035_v27 }
 0x252   : > { %v384_v47 = vmul.f32 0.5, %v3259_v53  ;;  %v407_v42 = vsel %vm403_vm4, %v399_v30, 0.0  ;;  %v678_v43 = vsel %vm403_vm4, %v665_v9, 0.0  ;;  %v680_v13 = vsel %vm679_vm3, %v664_v10, 0.0  ;;  %p2134_p3 = pnand %p2133_p13, %p2127_p2 }
 0x253   : > { %v389_v48 = vmul.f32 %v383_v63, %v3235_v39  ;;  %v3670_v60 = vand.u32 2147483647, %v3235_v39  ;;  %v400_v16 = vsel %vm3286_vm6, %v388_v24, %v1869_v33  ;;  %v668_v45 = vsel %vm662_vm1, %v666_v50, %v667_v35 }
 0x254   : > { %v654_v57 = vsel %vm3328_vm9, %v642_v7, %v1882_v14  ;;  %v655_v32 = vsel %vm3332_vm10, %v643_v23, %v1883_v12  ;;  %v408_v19 = vadd.f32 %v407_v42, %v406_v5  ;;  %v681_v0 = vadd.f32 %v680_v13, %v678_v43 }
 0x255   : > { %v1870_v51 = vadd.f32 -0.5, %v3670_v60  ;;  %v3671_v27 = vmov %v3670_v60  ;;  %v390_v52 = vmul.f32 %v384_v47, %v3259_v53  ;;  %v409_v4 = vsel %vm403_vm4, %v400_v16, 0.0 }
 0x256   : > { %vm3351_vm11 = vcmp.lt.f32.partialorder %v3671_v27, 1.0  ;;  %v682_v55 = vsel %vm403_vm4, %v668_v45, 0.0  ;;  %v1871_v41 = vadd.f32 -0.5, %v372_v11  ;;  %v669_v17 = vrot.slane %v654_v57, 1 }
 0x257   : > { %v401_v39 = vsel %vm3351_vm11, %v389_v48, %v1870_v51  ;;  %v670_v56 = vrot.slane %v655_v32, 1  ;;  %vm378_vm12 = vcmp.lt.f32.partialorder %v372_v11, 1.0  ;;  %v410_v18 = vadd.f32 %v409_v4, %v408_v19 }
 0x258   : > { %v683_v34 = vadd.f32 %v682_v55, %v681_v0  ;;  %v411_v6 = vsel %vm403_vm4, %v401_v39, 0.0  ;;  %v684_v58 = vsel %vm679_vm3, %v667_v35, 0.0  ;;  %v402_v10 = vsel %vm378_vm12, %v390_v52, %v1871_v41 }
 0x259   : > { %v671_v53 = vsel %vm662_vm1, %v669_v17, %v670_v56  ;;  %v412_v25 = vadd.f32 %v411_v6, %v410_v18  ;;  %v413_v49 = vsel %vm403_vm4, %v402_v10, 0.0  ;;  %v688_v33 = vsel %vm679_vm3, %v670_v56, 0.0  ;;  %v3682_v17 = vld [vmem:[#allocation48_spill] sm:$0xff]  ;;  %v3683_v6 = vld [vmem:[#allocation49_spill] sm:$0xff] }
 0x25a   : > { %v685_v54 = vadd.f32 %v684_v58, %v683_v34  ;;  %v686_v29 = vsel %vm403_vm4, %v671_v53, 0.0  ;;  %v3674_v30 = vrot.slane %v2884_v62, 1  ;;  %v3675_v44 = vrot.slane %v2875_v28, 1  ;;  %v3390_v51 = vpop.xlane.xlu0 %1569 }
 0x25b   : > { %v414_v63 = vadd.f32 %v413_v49, %v412_v25  ;;  %v3676_v7 = vrot.slane %v2937_v31, 1  ;;  %v3677_v50 = vrot.slane %v2884_v62, 2  ;;  %v3678_v23 = vrot.slane %v2926_v26, 1 }
 0x25c   : > { %v687_v24 = vadd.f32 %v686_v29, %v685_v54  ;;  %v888_v21 = vadd.f32 %v3674_v30, %v2884_v62  ;;  %v779_v36 = vadd.f32 %v3675_v44, %v2875_v28  ;;  %v3679_v12 = vrot.slane %v2875_v28, 2  ;;  %v1524_v62 = vpop.xlane.xlu1 %1523 }
 0x25d   : > { %v1128_v9 = vadd.f32 %v3676_v7, %v2937_v31  ;;  %v1002_v14 = vadd.f32 %v3678_v23, %v2926_v26  ;;  %v3680_v5 = vrot.slane %v2937_v31, 2  ;;  %v3681_v47 = vrot.slane %v2926_v26, 2  ;;  %v3686_v7 = vld [vmem:[#allocation42_spill] sm:$0xff] }
 0x25e   : > { %v689_v11 = vadd.f32 %v688_v33, %v687_v24  ;;  %v909_v35 = vadd.f32 %v3677_v50, %v888_v21  ;;  %v801_v38 = vadd.f32 %v3679_v12, %v779_v36  ;;  %v1189_v8 = vpop.permute.xlu0 %1188  ;;  %v1529_v56 = vmul.f32 0.06666667, %v3682_v17  ;;  %v3685_v36 = vld [vmem:[#allocation47_spill] sm:$0xff] }
 0x25f   : > { %v1149_v37 = vadd.f32 %v3680_v5, %v1128_v9  ;;  %v1023_v42 = vadd.f32 %v3681_v47, %v1002_v14  ;;  %v1202_v52 = vadd.f32 %v1189_v8, %v2984_v2  ;;  %v1530_v58 = vmul.f32 0.06666667, %v3683_v6  ;;  %v3689_v8 = vld [vmem:[#allocation46_spill] sm:$0xff] }
 0x260   : > { %v915_v61 = vmul.f32 0.11111111, %v909_v35  ;;  %v807_v43 = vmul.f32 0.11111111, %v801_v38  ;;  %v1191_v57 = vpop.permute.xlu1 %1190  ;;  %v1535_v2 = vsub.f32 0.0, %v1529_v56 }
 0x261   : > { %v1155_v13 = vmul.f32 0.11111111, %v1149_v37  ;;  %v1029_v48 = vmul.f32 0.11111111, %v1023_v42  ;;  %v1203_v4 = vadd.f32 %v1191_v57, %v2974_v15  ;;  %v1536_v24 = vsub.f32 0.0, %v1530_v58  ;;  %v3684_v15 = vld [vmem:[#allocation50_spill] sm:$0xff] }
 0x262   : > { %v1161_v60 = vmul.f32 %v915_v61, %v915_v61  ;;  %v1035_v16 = vmul.f32 %v807_v43, %v807_v43  ;;  %v1299_v41 = vmul.f32 2.0, %v807_v43  ;;  %v1531_v33 = vmul.f32 0.06666667, %v3684_v15 }
 0x263   : > { %v1532_v9 = vmul.f32 0.06666667, %v3686_v7  ;;  %v1541_v14 = vmul.f32 1.442695, %v1535_v2  ;;  %v1287_v12 = vmul.f32 %v915_v61, %v807_v43  ;;  %v1543_v37 = vmul.f32 1.442695, %v1536_v24 }
 0x264   : > { %v1167_v45 = vsub.f32 %v1155_v13, %v1161_v60  ;;  %v1041_v27 = vsub.f32 %v1029_v48, %v1035_v16  ;;  %v1335_v32 = vadd.f32 %v1161_v60, %v1035_v16  ;;  %v1305_v53 = vmul.f32 %v1299_v41, %v915_v61  ;;  %v3687_v13 = vld [vmem:[#allocation41_spill] sm:$0xff]  ;;  %v3688_v60 = vld [vmem:[#allocation43_spill] sm:$0xff] }
 0x265   : > { %v1537_v47 = vsub.f32 0.0, %v1531_v33  ;;  %v1409_v48 = vsub.f32 1.0, %v3687_v13  ;;  %v1408_v16 = vsub.f32 1.0, %v3688_v60  ;;  %v1538_v57 = vsub.f32 0.0, %v1532_v9  ;;  %v3690_v61 = vld [vmem:[#allocation45_spill] sm:$0xff] }
 0x266   : > { %v1347_v28 = vadd.f32 %v1167_v45, %v1041_v27  ;;  %v1341_v26 = vadd.f32 0.0001, %v1335_v32  ;;  %v1311_v21 = vadd.f32 0.0001, %v1305_v53  ;;  %v1533_v45 = vmul.f32 0.06666667, %v1524_v62 }
 0x267   : > { %415 = vadd.xlane.f32.xlu0 %v414_v63  ;;  %v1415_v17 = vmul.f32 0.5, %v1409_v48  ;;  %v1414_v62 = vmul.f32 0.5, %v1408_v16 }
 0x268   : > { %v1353_v19 = vadd.f32 0.0009, %v1347_v28  ;;  %v1310_v28 = vadd.f32 0.0001, %v3689_v8  ;;  %v1539_v56 = vsub.f32 0.0, %v1533_v45 }
 0x269   : > { %v1420_v7 = vmax.f32 %v1414_v62, 0.0 }
 0x26a   : > { %v1359_v39 = vmul.f32 %v1353_v19, %v1341_v26  ;;  %v1549_v24 = vmul.f32 1.442695, %v1539_v56 }
 0x26b   : > { %690 = vadd.xlane.f32.xlu0 %v689_v11  ;;  %v1426_v45 = vmin.f32 %v1420_v7, 1.0 }
 0x26c   : > { %1987 = vrcp.f32 %v1359_v39  ;;  %v1410_v39 = vsub.f32 1.0, %v3278_v40  ;;  %v1421_v40 = vmax.f32 %v1415_v17, 0.0 }
 0x26d   : > { %1989 = vrcp.f32 %v3685_v36 }
 0x26e   : > { %1991 = vpow2.f32 %v1541_v14  ;;  %v1416_v2 = vmul.f32 0.5, %v1410_v39  ;;  %v1427_v48 = vmin.f32 %v1421_v40, 1.0 }
 0x26f   : > { %1993 = vpow2.f32 %v1543_v37 }
 0x28f   : > { %v3392_v31 = vpop.xlane.xlu0 %1572 }
 0x290   : > { %v1527_v0 = vpop.xlane.xlu1 %1526 }
 0x291   : > { %v1534_v32 = vmul.f32 0.06666667, %v1527_v0 }
 0x293   : > { %v1213_v55 = vpop.permute.xlu0 %1212  ;;  %v1540_v6 = vsub.f32 0.0, %v1534_v32 }
 0x294   : > { %v1226_v18 = vadd.f32 %v1213_v55, %v1202_v52  ;;  %v1215_v34 = vpop.permute.xlu1 %1214  ;;  %v3691_v52 = vld [vmem:[#allocation40_spill] sm:$0xff]  ;;  %v1545_v55 = vmul.f32 1.442695, %v1537_v47 }
 0x295   : > { %v1227_v10 = vadd.f32 %v1215_v34, %v1203_v4  ;;  %v1547_v34 = vmul.f32 1.442695, %v1538_v57  ;;  %v1551_v9 = vmul.f32 1.442695, %v1540_v6 }
 0x296   : > { %v1240_v25 = vrot.slane %v1226_v18, 1  ;;  %v1261_v54 = vrot.slane %v1226_v18, 2  ;;  %1995 = vpow2.f32 %v1545_v55 }
 0x297   : > { %v1241_v49 = vrot.slane %v1227_v10, 1  ;;  %v1262_v29 = vrot.slane %v1227_v10, 2  ;;  %v1363_v63 = vpop.permute.xlu0 %1362  ;;  %1997 = vpow2.f32 %v1547_v34 }
 0x298   : > { %v1368_v5 = vadd.f32 %v3052_v3, %v1363_v63  ;;  %1999 = vpow2.f32 %v1549_v24 }
 0x299   : > { %v1242_v11 = vsel %vm662_vm1, %v1240_v25, %v1241_v49  ;;  %v1254_v30 = vadd.f32 %v1241_v49, %v1227_v10  ;;  %v1263_v50 = vsel %vm780_vm2, %v1261_v54, %v1262_v29  ;;  %v1411_v10 = vsub.f32 1.0, %v3212_v20 }
 0x29a   : > { %v1253_v44 = vadd.f32 %v1242_v11, %v1226_v18  ;;  %2001 = vpow2.f32 %v1551_v9 }
 0x29b   : > { %v1275_v35 = vadd.f32 %v1262_v29, %v1254_v30  ;;  %v1365_v23 = vpop.permute.xlu0 %1364  ;;  %v1988_v29 = vpop.eup %1987  ;;  %v1417_v36 = vmul.f32 0.5, %v1411_v10 }
 0x29c   : > { %v1274_v38 = vadd.f32 %v1263_v50, %v1253_v44  ;;  %v1369_v3 = vadd.f32 %v3691_v52, %v1365_v23  ;;  %v1990_v20 = vpop.eup %1989 }
 0x29d   : > { %v1281_v42 = vmul.f32 0.11111111, %v1275_v35  ;;  %v1423_v16 = vmax.f32 %v1417_v36, 0.0 }
 0x29e   : > { %v1280_v27 = vmul.f32 0.11111111, %v1274_v38 }
 0x29f   : > { %v1293_v19 = vsub.f32 %v1281_v42, %v1287_v12  ;;  %v1371_v26 = vpop.permute.xlu0 %1370 }
 0x2a0   : > { %v1292_v43 = vsub.f32 %v1280_v27, %v3690_v61  ;;  %v1376_v4 = vadd.f32 %v1371_v26, %v1368_v5  ;;  %v1422_v5 = vmax.f32 %v1416_v2, 0.0  ;;  %v1992_v27 = vpop.eup %1991 }
 0x2a1   : > { %v1317_v41 = vmul.f32 2.0, %v1293_v19  ;;  %v1994_v26 = vpop.eup %1993 }
 0x2a2   : > { %v1316_v18 = vmul.f32 2.0, %v1292_v43  ;;  %v1380_v25 = vrot.slane %v1376_v4, 1  ;;  %v1387_v54 = vrot.slane %v1376_v4, 2  ;;  %v1428_v32 = vmin.f32 %v1422_v5, 1.0 }
 0x2a3   : > { %v1323_v0 = vadd.f32 0.0009, %v1317_v41  ;;  %v1373_v58 = vpop.permute.xlu0 %1372  ;;  %v1996_v56 = vpop.eup %1995 }
 0x2a4   : > { %v1322_v53 = vadd.f32 0.0009, %v1316_v18  ;;  %v1377_v49 = vadd.f32 %v1373_v58, %v1369_v3  ;;  %v1998_v10 = vpop.eup %1997 }
 0x2a5   : > { %v1329_v63 = vmul.f32 %v1323_v0, %v1311_v21  ;;  %v1581_v0 = vmul.f32 0.0625, %v3390_v51 }
 0x2a6   : > { %v1381_v15 = vrot.slane %v1377_v49, 1  ;;  %v1388_v33 = vrot.slane %v1377_v49, 2  ;;  %v1328_v11 = vmul.f32 %v1322_v53, %v1310_v28 }
 0x2a7   : > { %v3411_v30 = vpop.permute.xlu0 %532  ;;  %v1407_v44 = vmul.f32 %v1988_v29, %v1329_v63 }
 0x2a8   : > { %v1382_v50 = vsel %vm662_vm1, %v1380_v25, %v1381_v15  ;;  %v1386_v35 = vadd.f32 %v1381_v15, %v1377_v49  ;;  %v1389_v23 = vsel %vm780_vm2, %v1387_v54, %v1388_v33  ;;  %v1406_v14 = vmul.f32 %v1990_v20, %v1328_v11 }
 0x2a9   : > { %v1385_v21 = vadd.f32 %v1382_v50, %v1376_v4  ;;  %v1413_v12 = vsub.f32 1.0, %v1407_v44  ;;  %vm1440_vm1 = vcmask 111616   ;;  %vm1438_vm2 = vcmask 113664  }
 0x2aa   : > { %v1393_v38 = vadd.f32 %v1388_v33, %v1386_v35  ;;  %v1412_v42 = vsub.f32 1.0, %v1406_v14  ;;  %v1429_v4 = vmin.f32 %v1423_v16, 1.0  ;;  %v1582_v49 = vmul.f32 0.0625, %v3392_v31  ;;  %v2000_v33 = vpop.eup %1999 }
 0x2ab   : > { %v1392_v37 = vadd.f32 %v1389_v23, %v1385_v21  ;;  %v3415_v47 = vpop.permute.xlu0 %534  ;;  %v1419_v13 = vmul.f32 0.5, %v1413_v12  ;;  %v1587_v11 = vsub.f32 0.0, %v1581_v0  ;;  %v2002_v20 = vpop.eup %2001 }
 0x2ac   : > { %v1395_v60 = vmul.f32 0.11111111, %v1393_v38  ;;  %v1418_v28 = vmul.f32 0.5, %v1412_v42  ;;  %v1588_v9 = vsub.f32 0.0, %v1582_v49 }
 0x2ad   : > { %v1394_v8 = vmul.f32 0.11111111, %v1392_v37  ;;  %v1425_v57 = vmax.f32 %v1419_v13, 0.0  ;;  %v1596_v5 = vmul.f32 1.442695, %v1587_v11 }
 0x2ae   : > { %v1433_v19 = vmul.f32 %v1427_v48, %v1395_v60  ;;  %v1424_v43 = vmax.f32 %v1418_v28, 0.0  ;;  %v1435_v34 = vmul.f32 %v1429_v4, %v1395_v60  ;;  %v1598_v48 = vmul.f32 1.442695, %v1588_v9 }
 0x2af   : > { %v1463_v61 = vpop.permute.xlu0 %1462  ;;  %v1432_v52 = vmul.f32 %v1426_v45, %v1394_v8  ;;  %v1434_v55 = vmul.f32 %v1428_v32, %v1394_v8  ;;  %v1431_v17 = vmin.f32 %v1425_v57, 1.0  ;;  %2003 = vpow2.f32 %v1596_v5 }
 0x2b0   : > { %v1468_v3 = vsub.f32 %v2999_v46, %v1463_v61  ;;  %v1441_v41 = vsel %vm1440_vm1, %v1433_v19, 0.0  ;;  %v1430_v39 = vmin.f32 %v1424_v43, 1.0  ;;  %v1445_v15 = vsel %vm1440_vm1, %v1435_v34, 0.0 }
 0x2b1   : > { %v1439_v62 = vsel %vm1438_vm2, %v1432_v52, 0.0  ;;  %v1443_v54 = vsel %vm1438_vm2, %v1434_v55, 0.0  ;;  %v1437_v29 = vmul.f32 %v1431_v17, %v1395_v60  ;;  %2005 = vpow2.f32 %v1598_v48 }
 0x2b2   : > { %v1602_v18 = vmul.f32 %v1992_v27, %v1468_v3  ;;  %v1442_v6 = vadd.f32 %v1441_v41, %v1439_v62  ;;  %v1604_v53 = vmul.f32 %v1996_v56, %v1468_v3  ;;  %v1436_v46 = vmul.f32 %v1430_v39, %v1394_v8 }
 0x2b3   : > { %v1465_v58 = vpop.permute.xlu0 %1464  ;;  %v1606_v44 = vmul.f32 %v2000_v33, %v1468_v3  ;;  %v1449_v31 = vsel %vm1440_vm1, %v1437_v29, 0.0  ;;  %v552_v19 = vsel %vm550_vm0, %v3415_v47, 0.0  ;;  %v551_v43 = vsel %vm550_vm0, %v3411_v30, 0.0 }
 0x2b4   : > { %v1469_v25 = vsub.f32 %v3002_v1, %v1465_v58  ;;  %v1444_v63 = vadd.f32 %v1443_v54, %v1442_v6  ;;  %v1608_v2 = vand.u32 2147483647, %v1602_v18  ;;  %v1610_v36 = vand.u32 2147483647, %v1604_v53 }
 0x2b5   : > { %v1447_v1 = vsel %vm1438_vm2, %v1436_v46, 0.0  ;;  %v1612_v37 = vand.u32 2147483647, %v1606_v44  ;;  %v553_v4 = vadd.f32 %v552_v19, %v551_v43 }
 0x2b6   : > { %v1603_v40 = vmul.f32 %v1994_v26, %v1469_v25  ;;  %v1605_v24 = vmul.f32 %v1998_v10, %v1469_v25  ;;  %v1446_v51 = vadd.f32 %v1445_v15, %v1444_v63  ;;  %v1614_v35 = vsel %vm550_vm0, %v1608_v2, 0.0  ;;  %v3692_v10 = vld [vmem:[#allocation51_spill] sm:$0xff] }
 0x2b7   : > { %v1607_v23 = vmul.f32 %v2002_v20, %v1469_v25  ;;  %v1617_v42 = vsel %vm550_vm0, %v1610_v36, 0.0  ;;  %v537_v45 = vpop.permute.xlu0 %536  ;;  %v1621_v8 = vsel %vm550_vm0, %v1612_v37, 0.0 }
 0x2b8   : > { %v1609_v7 = vand.u32 2147483647, %v1603_v40  ;;  %v1448_v50 = vadd.f32 %v1447_v1, %v1446_v51  ;;  %v1611_v21 = vand.u32 2147483647, %v1605_v24  ;;  %v554_v52 = vsel %vm550_vm0, %v537_v45, 0.0 }
 0x2b9   : > { %v1613_v60 = vand.u32 2147483647, %v1607_v23  ;;  %v555_v41 = vadd.f32 %v554_v52, %v553_v4 }
 0x2ba   : > { %v1615_v14 = vsel %vm550_vm0, %v1609_v7, 0.0  ;;  %v1450_v38 = vadd.f32 %v1449_v31, %v1448_v50  ;;  %v1619_v16 = vsel %vm550_vm0, %v1611_v21, 0.0 }
 0x2bb   : > { %v1616_v12 = vadd.f32 %v1615_v14, %v1614_v35  ;;  %v1623_v57 = vsel %vm550_vm0, %v1613_v60, 0.0  ;;  %v541_v26 = vpop.permute.xlu0 %540 }
 0x2bc   : > { %1451 = vadd.xlane.f32.xlu0 %v1450_v38  ;;  %v558_v47 = vsel %vm550_vm0, %v541_v26, 0.0  ;;  %v2004_v34 = vpop.eup %2003 }
 0x2bd   : > { %v1618_v13 = vadd.f32 %v1617_v42, %v1616_v12  ;;  %v1637_v53 = vmul.f32 %v2004_v34, %v3692_v10 }
 0x2be   : > { %v2006_v30 = vpop.eup %2005 }
 0x2bf   : > { %v1620_v27 = vadd.f32 %v1619_v16, %v1618_v13  ;;  %v543_v56 = vpop.permute.xlu0 %542  ;;  %v1638_v25 = vmul.f32 %v2006_v30, %v3021_v59  ;;  %v1643_v46 = vand.u32 2147483647, %v1637_v53 }
 0x2c0   : > { %v560_v0 = vsel %vm550_vm0, %v543_v56, 0.0  ;;  %v1666_v56 = vlaneseq }
 0x2c1   : > { %v1622_v28 = vadd.f32 %v1621_v8, %v1620_v27  ;;  %v1644_v54 = vand.u32 2147483647, %v1638_v25  ;;  %v1651_v49 = vsel %vm679_vm3, %v1643_v46, 0.0 }
 0x2c2   : > { %v1652_v40 = vadd.f32 %v1651_v49, %v3337_v22 }
 0x2c3   : > { %v1624_v32 = vadd.f32 %v1623_v57, %v1622_v28  ;;  %v1653_v2 = vsel %vm403_vm4, %v1644_v54, 0.0 }
 0x2c4   : > { %v1654_v15 = vadd.f32 %v1653_v2, %v1652_v40 }
 0x2c5   : > { %v1576_v61 = vpop.xlane.xlu1 %1575  ;;  %1625 = vadd.xlane.f32.xlu0 %v1624_v32 }
 0x2c6   : > { %v1583_v3 = vmul.f32 0.0625, %v1576_v61 }
 0x2c8   : > { %v1589_v55 = vsub.f32 0.0, %v1583_v3 }
 0x2c9   : > { %v539_v39 = vpop.permute.xlu1 %538 }
 0x2ca   : > { %v1600_v17 = vmul.f32 1.442695, %v1589_v55  ;;  %v556_v62 = vsel %vm550_vm0, %v539_v39, 0.0 }
 0x2cb   : > { %v557_v18 = vadd.f32 %v556_v62, %v555_v41 }
 0x2cc   : > { %2007 = vpow2.f32 %v1600_v17 }
 0x2cd   : > { %v559_v6 = vadd.f32 %v558_v47, %v557_v18  ;;  %v1667_v18 = vshrl.u32 %v1666_v56, 7  ;;  %v1669_v47 = vand.u32 127, %v1666_v56 }
 0x2cf   : > { %v561_v58 = vadd.f32 %v560_v0, %v559_v6  ;;  %vm1675_vm0 = vcmp.eq.s32.totalorder %v1669_v47, 1  ;;  %vm1671_vm4 = vcmp.eq.s32.totalorder %v1669_v47, 0  ;;  %vm1680_vm15 = vcmp.eq.s32.totalorder %v1669_v47, 2 }
 0x2d0   : > { %vm1685_vm6 = vcmp.eq.s32.totalorder %v1669_v47, 3  ;;  %vm1690_vm8 = vcmp.eq.s32.totalorder %v1669_v47, 4  ;;  %vm1695_vm9 = vcmp.eq.s32.totalorder %v1669_v47, 5 }
 0x2d1   : > { %562 = vadd.xlane.f32.xlu1 %v561_v58 }
 0x2d9   : > { %v2008_v29 = vpop.eup %2007 }
 0x2da   : > { %v1639_v63 = vmul.f32 %v2008_v29, %v3692_v10 }
 0x2dc   : > { %v1645_v24 = vand.u32 2147483647, %v1639_v63 }
 0x2de   : > { %v1655_v33 = vsel %vm679_vm3, %v1645_v24, 0.0  ;;  %vm1670_vm3 = vcmp.eq.s32.totalorder %v1667_v18, 0 }
 0x2df   : > { %v1656_v11 = vadd.f32 %v1655_v33, %v1654_v15  ;;  %vm1676_vm13 = vmand %vm1670_vm3, %vm1675_vm0 }
 0x2e0   : > { %vm1672_vm14 = vmand %vm1670_vm3, %vm1671_vm4 }
 0x2e1   : > { %1657 = vadd.xlane.f32.xlu1 %v1656_v11  ;;  %vm1681_vm5 = vmand %vm1670_vm3, %vm1680_vm15 }
 0x2e2   : > { %vm1686_vm7 = vmand %vm1670_vm3, %vm1685_vm6 }
 0x2e3   : > { %vm1691_vm10 = vmand %vm1670_vm3, %vm1690_vm8 }
 0x2e4   : > { %vm1696_vm11 = vmand %vm1670_vm3, %vm1695_vm9 }
 0x2f0   : > { %v416_v51 = vpop.xlane.xlu0 %415 }
 0x2f1   : > { %v417_v44 = vrot.slane %v416_v51, 4 }
 0x2f3   : > { %v418_v59 = vadd.f32 %v417_v44, %v416_v51 }
 0x2f4   : > { %v691_v9 = vpop.xlane.xlu0 %690 }
 0x2f5   : > { %v419_v36 = vrot.slane %v418_v59, 2  ;;  %v692_v31 = vrot.slane %v691_v9, 4 }
 0x2f7   : > { %v420_v7 = vadd.f32 %v419_v36, %v418_v59  ;;  %v693_v22 = vadd.f32 %v692_v31, %v691_v9 }
 0x2f9   : > { %v421_v1 = vrot.slane %v420_v7, 1  ;;  %v694_v12 = vrot.slane %v693_v22, 2 }
 0x2fb   : > { %v422_v20 = vadd.f32 %v421_v1, %v420_v7  ;;  %v695_v48 = vadd.f32 %v694_v12, %v693_v22 }
 0x2fd   : > { %1895 = vpush %v422_v20  ;;  %v696_v8 = vrot.slane %v695_v48, 1 }
 0x2ff   : > { %v697_v19 = vadd.f32 %v696_v8, %v695_v48 }
 0x32e   : > { %s1896_s29 = spop %1895 }
 0x32f   : > { %v1673_v34 = vstv %s1896_s29 }
 0x330   : > { %v1674_v30 = vsel %vm1672_vm14, %v1673_v34, 0.0 }
 0x345   : > { %v1452_v50 = vpop.xlane.xlu0 %1451 }
 0x346   : > { %v1453_v23 = vrot.slane %v1452_v50, 4 }
 0x348   : > { %v1454_v14 = vadd.f32 %v1453_v23, %v1452_v50 }
 0x34a   : > { %v1455_v37 = vrot.slane %v1454_v14, 2 }
 0x34c   : > { %v1456_v45 = vadd.f32 %v1455_v37, %v1454_v14 }
 0x34e   : > { %v1626_v35 = vpop.xlane.xlu0 %1625  ;;  %v1457_v32 = vrot.slane %v1456_v45, 1 }
 0x34f   : > { %v1627_v21 = vrot.slane %v1626_v35, 4 }
 0x350   : > { %v1458_v43 = vadd.f32 %v1457_v32, %v1456_v45 }
 0x351   : > { %v1628_v38 = vadd.f32 %v1627_v21, %v1626_v35 }
 0x353   : > { %v1629_v13 = vrot.slane %v1628_v38, 2 }
 0x355   : > { %v1630_v27 = vadd.f32 %v1629_v13, %v1628_v38 }
 0x357   : > { %v1631_v26 = vrot.slane %v1630_v27, 1 }
 0x359   : > { %v1632_v52 = vadd.f32 %v1631_v26, %v1630_v27 }
 0x35a   : > { %v563_v5 = vpop.xlane.xlu1 %562 }
 0x35b   : > { %v564_v42 = vrot.slane %v563_v5, 4 }
 0x35d   : > { %v565_v60 = vadd.f32 %v564_v42, %v563_v5 }
 0x35f   : > { %v566_v16 = vrot.slane %v565_v60, 2 }
 0x361   : > { %v567_v28 = vadd.f32 %v566_v16, %v565_v60 }
 0x363   : > { %v568_v57 = vrot.slane %v567_v28, 1 }
 0x365   : > { %v569_v61 = vadd.f32 %v568_v57, %v567_v28 }
 0x367   : > { %1897 = vpush %v569_v61 }
 0x368   : > { %1899 = vpush %v697_v19 }
 0x369   : > { %1901 = vpush %v1458_v43 }
 0x36a   : > { %1903 = vpush %v1632_v52  ;;  %v1658_v3 = vpop.xlane.xlu1 %1657 }
 0x36b   : > { %v1659_v4 = vrot.slane %v1658_v3, 4 }
 0x36d   : > { %v1660_v55 = vadd.f32 %v1659_v4, %v1658_v3 }
 0x36f   : > { %v1661_v41 = vrot.slane %v1660_v55, 2 }
 0x371   : > { %v1662_v39 = vadd.f32 %v1661_v41, %v1660_v55 }
 0x373   : > { %v1663_v17 = vrot.slane %v1662_v39, 1 }
 0x375   : > { %v1664_v62 = vadd.f32 %v1663_v17, %v1662_v39 }
 0x377   : > { %1905 = vpush %v1664_v62 }
 0x398   : > { %s1898_s0 = spop %1897 }
 0x399   : > { %v1677_v6 = vstv %s1898_s0  ;;  %s1900_s28 = spop %1899 }
 0x39a   : > { %v1678_v0 = vsel %vm1676_vm13, %v1677_v6, 0.0  ;;  %v1682_v10 = vstv %s1900_s28  ;;  %s1902_s24 = spop %1901 }
 0x39b   : > { %v1679_v58 = vadd.f32 %v1678_v0, %v1674_v30  ;;  %v1683_v53 = vsel %vm1681_vm5, %v1682_v10, 0.0  ;;  %v1687_v46 = vstv %s1902_s24  ;;  %s1904_s6 = spop %1903 }
 0x39c   : > { %v1688_v54 = vsel %vm1686_vm7, %v1687_v46, 0.0  ;;  %v1692_v29 = vstv %s1904_s6 }
 0x39d   : > { %v1684_v25 = vadd.f32 %v1683_v53, %v1679_v58  ;;  %v1693_v63 = vsel %vm1691_vm10, %v1692_v29, 0.0 }
 0x39f   : > { %v1689_v49 = vadd.f32 %v1688_v54, %v1684_v25 }
 0x3a1   : > { %v1694_v2 = vadd.f32 %v1693_v63, %v1689_v49 }
 0x3a8   : > { %s1906_s20 = spop %1905 }
 0x3a9   : > { %v1697_v40 = vstv %s1906_s20 }
 0x3aa   : > { %v1698_v24 = vsel %vm1696_vm11, %v1697_v40, 0.0 }
 0x3ab   : > { %v1699_v15 = vadd.f32 %v1698_v24, %v1694_v2 }
 0x3ad   : > { %1700 = vst [vmem:[%s332_s12] sm:$0xff] %v1699_v15 }
 0x3ae   : > { %2137 = shalt.err (!%p2134_p3)
}
 0x3af   : > { %s2138_s25 = scalar_lea.hbm %s1713_s13, 128  ;;  %s2142_s29 = scalar_lea.hbm %s3493_s4, 512 }
 0x3b0   : > { %p2139_p11 = scmp.ne.s32.totalorder %s1713_s13, %s2138_s25  ;;  %p2143_p7 = scmp.lt.s32.totalorder %s1713_s13, %s3493_s4 }
 0x3b1   : > { %p2144_p1 = scmp.lt.s32.totalorder %s2142_s29, %s2138_s25 }
 0x3b2   : > { %p2140_p4 = pnand %p2139_p11, %p3693_p9 }
 0x3b3   : > { %p2145_p8 = por %p2144_p1, %p2143_p7 }
 0x3b4   : > { %p2141_p5 = pneg %p2140_p4 }
 0x3b6   : > { %p2146_p12 = pnand %p2145_p8, %p2141_p5 }
 0x3b8   : > { %2149 = shalt.err (!%p2146_p12)
}
 0x3b9   : > { %1915 = dma.vmem_to_hbm [thread:$0]  (%p3693_p9), %s1716_s5, 128, %s1713_s13, %s1702_s9  }
 0x3ba PF: > { %p1935_p0 = scmp.ge.s32.totalorder %s2196_s18, 2  ;;  %s1727_s24 = sand.u32 1, %s2184_s15  }
 0x3bb   : > { %p3694_p2 = scmp.ne.s32.totalorder %s3545_s27, 0  ;;  %s1728_s6 = scalar_lea.sflag [#allocation4], %s1727_s24 }
 0x3bd   : > { %p1931_p10 = pnand %p1935_p0, %p3694_p2 }
 0x3bf   : > { %p1932_p6 = pneg %p1931_p10 }
 0x3c1   : > { %2179 = dma.done.wait (%p1932_p6), %s1728_s6, 128  }
 0x3c2   : > { %2181 = vsyncadd (%p1932_p6), %s1728_s6, 4294967168  ;;  %s3695_s23 = sld [smem:[#allocation15_spill]]  ;;  %p23_p13 = scmp.ge.s32.totalorder %s2258_s21, 6  }
 0x3c3   : > { %s3696_s15 = smov %s2188_s16  ;;  %s3697_s16 = smov %s2192_s17 }
 0x3c4   : > { %s3699_s18 = smov %s2258_s21  ;;  %25 = sbr.rel (!%p23_p13) target bundleno = 12 (0xc), region = 118 }
 0x3c8   : > { %s3698_s17 = smov %s3695_s23 }
 0x3c9   :  { %1733 = vsyncpa [#allocation3], 1 }
 0x3ca   :  { %1735 = vsyncpa [#allocation3 + $0x1], 1 }
 0x3cb   :  { %1736 = vsyncpa [#allocation6], 1 }
 0x3cc   :  { %1738 = vsyncpa [#allocation6 + $0x1], 1 }
 0x3cd   :  { %1739 = vsyncpa [#allocation9], 1 }
 0x3ce   :  { %1741 = vsyncpa [#allocation9 + $0x1], 1 }
 0x3cf   :  { %1742 = vsyncpa [#allocation4], 1 }
 0x3d0   :  { %1744 = vsyncpa [#allocation4 + $0x1], 1 }

</bundles_post_ra>
